<compile_context>
chip_gen: v7x
topology: tpu7x:2x2x1
jax: 0.10.0
libtpu: 0.0.40
codegen_flags: <defaults>
</compile_context>

<pallas_src>
import jax
import jax.numpy as jnp
import numpy as np
from jax.experimental import pallas as pl
from jax.experimental.pallas import tpu as pltpu


def ptrn_tfidf_dnn_kernel(pt_ref, scores_ref, w_ref, b_ref, out_ref):
    # tf-idf scaling + sum over the sequence axis (the 1/S of the mean has
    # been folded into the fused weight on the host):
    #   embeds[b] = sum_s scores[b, s] * pt[b, s, :]
    scores = scores_ref[...][:, :, None]                        # (TB, S, 1)
    scaled = pt_ref[...] * scores                               # (TB, S, E)
    embeds = jnp.sum(scaled, axis=1)                            # (TB, E)
    # Single fused linear (lin1..lin5 + hidden2tag collapsed on the host),
    # computed at the lane-dense padded width (l_pad = 128)...
    acc = (
        jnp.dot(embeds, w_ref[...], preferred_element_type=jnp.float32)
        + b_ref[...]
    )                                                           # (TB, L_pad)
    # ...but only the real labels are written back to HBM (compact output).
    out_ref[...] = acc[:, : out_ref.shape[1]]                   # (TB, L)


def fuse_params(params, inv_s):
    """Collapse the activation-free layer chain into one weight + one bias.

    Valid only for inference: Dropout(0.2) is identity in eval mode and there
    are no nonlinearities between the Linear layers, so
      x@W1+b1 -> ... -> @Wt+bt  ==  x@(W1@...@Wt) + b_fused   exactly.
    Done in float64 on the host so reassociation drift stays negligible; the
    mean's 1/S is folded into the fused weight (commutes exactly).
    """
    w = np.asarray(params["w1"], dtype=np.float64)
    b = np.asarray(params["b1"], dtype=np.float64)
    for n in ("2", "3", "4", "5", "t"):
        wn = np.asarray(params["w" + n], dtype=np.float64)
        bn = np.asarray(params["b" + n], dtype=np.float64)
        w = w @ wn
        b = b @ wn + bn
    w = w * inv_s
    return jnp.asarray(w, jnp.float32), jnp.asarray(b, jnp.float32)


def ptrn_tfidf_dnn(pt, scores, params, *, block_b=128):
    """pt: (B, S, E) f32; scores: (B, S, 1) or (B, S) f32.

    Returns (B, num_labels) f32 label scores (one row per document).
    """
    B, S, E = pt.shape
    num_labels = params["wt"].shape[1]

    if scores.ndim == 3:
        scores = scores[:, :, 0]                                # (B, S)

    # Host-side algebraic fusion of the 6-layer chain (+ 1/S), eval-mode exact.
    w_fused, b_fused = fuse_params(params, 1.0 / S)

    # Lane-dense padding of the label axis for the MXU matmul / resident W, b.
    l_pad = ((num_labels + 127) // 128) * 128
    w_pad = jnp.zeros((E, l_pad), jnp.float32).at[:, :num_labels].set(w_fused)
    b_pad = jnp.zeros((1, l_pad), jnp.float32).at[:, :num_labels].set(b_fused)

    # Batch tiling; pad B up to a multiple of the tile instead of asserting.
    tb = min(block_b, B)
    pad_b = (-B) % tb
    if pad_b:
        pt = jnp.pad(pt, ((0, pad_b), (0, 0), (0, 0)))
        scores = jnp.pad(scores, ((0, pad_b), (0, 0)))
    b_total = B + pad_b
    grid = (b_total // tb,)

    cost = pl.CostEstimate(
        flops=2 * b_total * S * E + 2 * b_total * E * l_pad,
        transcendentals=0,
        bytes_accessed=4 * (pt.size + scores.size + w_pad.size + b_pad.size
                            + b_total * num_labels),
    )

    out = pl.pallas_call(
        ptrn_tfidf_dnn_kernel,
        out_shape=jax.ShapeDtypeStruct((b_total, num_labels), jnp.float32),
        grid_spec=pltpu.PrefetchScalarGridSpec(
            num_scalar_prefetch=0,
            grid=grid,
            in_specs=[
                pl.BlockSpec((tb, S, E), lambda i: (i, 0, 0)),   # pt tile
                pl.BlockSpec((tb, S), lambda i: (i, 0)),         # scores tile
                pl.BlockSpec((E, l_pad), lambda i: (0, 0)),      # fused W (resident)
                pl.BlockSpec((1, l_pad), lambda i: (0, 0)),      # fused b (resident)
            ],
            out_specs=pl.BlockSpec((tb, num_labels), lambda i: (i, 0)),
        ),
        compiler_params=pltpu.CompilerParams(
            dimension_semantics=("parallel",),   # batch rows are independent
        ),
        cost_estimate=cost,
    )(pt, scores, w_pad, b_pad)

    return out[:B]


# ----------------------------- parameter init -------------------------------
def xavier_uniform(key, fan_in, fan_out):
    limit = jnp.sqrt(6.0 / (fan_in + fan_out))
    # stored as (in, out) == transpose of PyTorch's (out, in) weight
    return jax.random.uniform(key, (fan_in, fan_out), jnp.float32, -limit, limit)


def linear_bias(key, fan_in, fan_out):
    bound = 1.0 / jnp.sqrt(fan_in)
    return jax.random.uniform(key, (1, fan_out), jnp.float32, -bound, bound)


def make_params(key, embedding_dim, hidden_dim, num_labels):
    keys = jax.random.split(key, 12)
    dims = [
        (embedding_dim, hidden_dim),  # lin1
        (hidden_dim, hidden_dim),     # lin2
        (hidden_dim, hidden_dim),     # lin3
        (hidden_dim, hidden_dim),     # lin4
        (hidden_dim, hidden_dim),     # lin5
        (hidden_dim, num_labels),     # hidden2tag
    ]
    names = ["1", "2", "3", "4", "5", "t"]
    params = {}
    for i, ((fi, fo), n) in enumerate(zip(dims, names)):
        params["w" + n] = xavier_uniform(keys[2 * i], fi, fo)
        params["b" + n] = linear_bias(keys[2 * i + 1], fi, fo)
    return params


def reference_forward(pt, scores, params):
    """Unfused reference matching the PyTorch forward (eval mode), batched."""
    # TODO(synk): nn.Dropout(0.2) is identity in eval mode; training-time
    # stochastic masking is not reproduced (and would invalidate the fusion).
    scaled = pt * scores                       # (B, S, E)
    embeds = jnp.mean(scaled, axis=1)          # (B, E)
    h = embeds @ params["w1"] + params["b1"]
    h = h @ params["w2"] + params["b2"]
    h = h @ params["w3"] + params["b3"]
    h = h @ params["w4"] + params["b4"]
    h = h @ params["w5"] + params["b5"]
    return h @ params["wt"] + params["bt"]     # (B, num_labels)


if __name__ == "__main__":
    BATCH, SEQ, EMBED, HIDDEN, NUM_LABELS = 256, 8, 32, 32, 4

    key = jax.random.PRNGKey(0)
    k_pt, k_sc, k_par = jax.random.split(key, 3)

    # pretrained word vectors per doc and per-token tf-idf scores
    # TODO(synk): vocab lookup (ix_to_word) and corp.get_tf_idf_seq are
    # host-side Python/dict ops; the kernel consumes precomputed scores.
    pt = jax.random.normal(k_pt, (BATCH, SEQ, EMBED), jnp.float32)
    scores = jax.random.uniform(k_sc, (BATCH, SEQ, 1), jnp.float32)
    params = make_params(k_par, EMBED, HIDDEN, NUM_LABELS)

    out = ptrn_tfidf_dnn(pt, scores, params)
    out = jax.block_until_ready(out)

    ref = reference_forward(pt, scores, params)
    assert out.shape == (BATCH, NUM_LABELS)
    # fused (f64) weight chain vs six sequential f32 matmuls reassociates adds
    assert jnp.allclose(out, ref, atol=1e-4, rtol=1e-4)

    print("KERNEL_OK")
</pallas_src>

<mosaic_0001>
module attributes {stable_mosaic.version = 11 : i64} {
  func.func @ptrn_tfidf_dnn_kernel(%arg0: i32, %arg1: memref<128x8x32xf32, #tpu.memory_space<vmem>>, %arg2: memref<128x8xf32, #tpu.memory_space<vmem>>, %arg3: memref<32x128xf32, #tpu.memory_space<vmem>>, %arg4: memref<1x128xf32, #tpu.memory_space<vmem>>, %arg5: memref<128x4xf32, #tpu.memory_space<vmem>>) attributes {dimension_semantics = [#tpu.dimension_semantics<parallel>], iteration_bounds = array<i64: 2>, scalar_prefetch = 0 : i64, scratch_operands = 0 : i64, tpu.core_type = #tpu.core_type<tc>, window_params = [{transform_indices = @transform_0, window_bounds = array<i64: 128, 8, 32>}, {transform_indices = @transform_1, window_bounds = array<i64: 128, 8>}, {pipeline_mode = #tpu.pipeline_mode<synchronous>, transform_indices = @transform_2, window_bounds = array<i64: 32, 128>}, {pipeline_mode = #tpu.pipeline_mode<synchronous>, transform_indices = @transform_3, window_bounds = array<i64: 1, 128>}, {transform_indices = @transform_4, window_bounds = array<i64: 128, 4>}]} {
    %c0 = arith.constant 0 : index
    %c0_0 = arith.constant 0 : index
    %0 = vector.load %arg2[%c0, %c0_0] : memref<128x8xf32, #tpu.memory_space<vmem>>, vector<128x8xf32>
    %1 = vector.shape_cast %0 : vector<128x8xf32> to vector<128x8x1xf32>
    %c0_1 = arith.constant 0 : index
    %c0_2 = arith.constant 0 : index
    %c0_3 = arith.constant 0 : index
    %2 = vector.load %arg1[%c0_1, %c0_2, %c0_3] : memref<128x8x32xf32, #tpu.memory_space<vmem>>, vector<128x8x32xf32>
    %3 = vector.broadcast %1 : vector<128x8x1xf32> to vector<128x8x32xf32>
    %4 = arith.mulf %2, %3 : vector<128x8x32xf32>
    %cst = arith.constant dense<0.000000e+00> : vector<128x32xf32>
    %5 = vector.multi_reduction <add>, %4, %cst [1] : vector<128x8x32xf32> to vector<128x32xf32>
    %c0_4 = arith.constant 0 : index
    %c0_5 = arith.constant 0 : index
    %6 = vector.load %arg3[%c0_4, %c0_5] : memref<32x128xf32, #tpu.memory_space<vmem>>, vector<32x128xf32>
    %cst_6 = arith.constant dense<0.000000e+00> : vector<128x128xf32>
    %7 = tpu.matmul %5, %6, %cst_6 {dimension_numbers = #tpu.dot_dimension_numbers<[1], [0], [0], [1], [0, 0, 1, 1], [], []>} : vector<128x32xf32>, vector<32x128xf32>, vector<128x128xf32> -> vector<128x128xf32>
    %c0_7 = arith.constant 0 : index
    %c0_8 = arith.constant 0 : index
    %8 = vector.load %arg4[%c0_7, %c0_8] : memref<1x128xf32, #tpu.memory_space<vmem>>, vector<1x128xf32>
    %9 = vector.broadcast %8 : vector<1x128xf32> to vector<128x128xf32>
    %10 = arith.addf %7, %9 : vector<128x128xf32>
    %11 = vector.extract_strided_slice %10 {offsets = [0, 0], sizes = [128, 4], strides = [1, 1]} : vector<128x128xf32> to vector<128x4xf32>
    %c0_9 = arith.constant 0 : index
    %c0_10 = arith.constant 0 : index
    %12 = vector.load %arg5[%c0_9, %c0_10] : memref<128x4xf32, #tpu.memory_space<vmem>>, vector<128x4xf32>
    tpu.vector_store %arg5[%c0_9, %c0_10], %11 {strides = array<i32>} : memref<128x4xf32, #tpu.memory_space<vmem>>, vector<128x4xf32>,
    return
  }
  func.func @transform_0(%arg0: i32) -> (i32, i32, i32) {
    %c0_i32 = arith.constant 0 : i32
    %c0_i32_0 = arith.constant 0 : i32
    %c0_i32_1 = arith.constant 0 : i32
    return %arg0, %c0_i32, %c0_i32_0 : i32, i32, i32
  }
  func.func @transform_1(%arg0: i32) -> (i32, i32) {
    %c0_i32 = arith.constant 0 : i32
    %c0_i32_0 = arith.constant 0 : i32
    return %arg0, %c0_i32 : i32, i32
  }
  func.func @transform_2(%arg0: i32) -> (i32, i32) {
    %c0_i32 = arith.constant 0 : i32
    %c0_i32_0 = arith.constant 0 : i32
    %c0_i32_1 = arith.constant 0 : i32
    return %c0_i32, %c0_i32_0 : i32, i32
  }
  func.func @transform_3(%arg0: i32) -> (i32, i32) {
    %c0_i32 = arith.constant 0 : i32
    %c0_i32_0 = arith.constant 0 : i32
    %c0_i32_1 = arith.constant 0 : i32
    return %c0_i32, %c0_i32_0 : i32, i32
  }
  func.func @transform_4(%arg0: i32) -> (i32, i32) {
    %c0_i32 = arith.constant 0 : i32
    %c0_i32_0 = arith.constant 0 : i32
    return %arg0, %c0_i32 : i32, i32
  }
}

</mosaic_0001>

<bundles_post_ra>
// kernel: tpu_custom_call.1
= control target key start
LH: loop header
LB: loop body
LE: loop exit
PB: predicated region body
PF: predicated region fallthrough
CT: control target
= control target key end

     0   :  { %s2947_s15 = smov 0   ;;  %s4421_s0 = inlined_call_operand.vmem [shape: f32[256,8,32], index: 0, kind: input, shape index: {}]   ;;  %s4422_s1 = inlined_call_operand.vmem [shape: f32[256,8], index: 1, kind: input, shape index: {}]   ;;  %s4423_s2 = inlined_call_operand.vmem [shape: f32[32,128], index: 2, kind: input, shape index: {}]   ;;  %s4424_s3 = inlined_call_operand.vmem [shape: f32[1,128], index: 3, kind: input, shape index: {}]   ;;  %s4425_s4 = inlined_call_operand.vmem [shape: f32[256,4], index: 4, kind: output, shape index: {}]  }
   0x1 LB: > { %s2808_s16 = sadd.s32 4294967295, %s2920_s15   ;;  %p2812_p0 = scmp.ge.s32.totalorder %s2920_s15, 1  ;;  %s2920_s15 = sphi %s2947_s15, %s14_s15  }
   0x2   : > { %p174_p1 = scmp.lt.s32.totalorder %s2920_s15, 3 }
   0x4   : > { %p175_p2 = pnand %p2812_p0, %p174_p1 }
   0x6   : > { %178 = sbr.rel (%p175_p2) target bundleno = 658 (0x292), region = 36 }
   0xd   : > { %s2815_s17 = sshll.u32 %s2808_s16, 4  ;;  %v239_v0 = vlaneseq  ;;  %s2813_s22 = sshll.u32 %s2808_s16, 7  ;;  %vm1391_vm0 = vcmask 261120   ;;  %vm2427_vm1 = vcmask 1041409   ;;  %vm2429_vm2 = vcmask 1042434  }
   0xe   : > { %p212_p3 = scmp.lt.s32.totalorder %s2815_s17, 31  ;;  %p206_p4 = scmp.lt.s32.totalorder %s2813_s22, 255  ;;  %vm2431_vm3 = vcmask 1043459   ;;  %vm2433_vm4 = vcmask 1044484   ;;  %vm2435_vm5 = vcmask 1045509   ;;  %vm2437_vm6 = vcmask 1046534  }
   0xf   : > { %v2957_v1 = vshrl.u32 %v239_v0, 7  ;;  %vm2439_vm7 = vcmask 1047559   ;;  %vm2723_vm8 = vcmask 31744  }
  0x10   : > { %s4486_s17 = smov (!%p212_p3, %s2815_s17), 31  ;;  %s4488_s22 = smov (!%p206_p4, %s2813_s22), 255 }
  0x11   : > { %v2962_v2 = vsub.s32 0, %v2957_v1  ;;  %s2816_s18 = sshll.u32 %s4486_s17, 3  ;;  %v2973_v3 = vsub.s32 1, %v2957_v1  ;;  %v2990_v10 = vsub.s32 2, %v2957_v1  ;;  %v3011_v19 = vsub.s32 3, %v2957_v1  ;;  %s2814_s27 = sshll.u32 %s4488_s22, 3 }
  0x12   : > { %s2970_s21 = scalar_lea.vmem %s4422_s1, %s2816_s18  ;;  %v3022_v24 = vsub.s32 4, %v2957_v1  ;;  %v3033_v29 = vsub.s32 5, %v2957_v1  ;;  %v3058_v40 = vsub.s32 6, %v2957_v1  ;;  %v3087_v53 = vsub.s32 7, %v2957_v1  ;;  %s3180_s8 = scalar_lea.vmem %s4421_s0, %s2814_s27 }
  0x13   : > { %v2976_v4 = vld [vmem:[%s2970_s21 + $0x40] sm:$0xff]  ;;  %v2993_v11 = vld [vmem:[%s2970_s21 + $0x8] sm:$0xff]  ;;  %v3040_v32 = vld [vmem:[%s2970_s21 + $0x10] sm:$0xff]  ;;  %s4384_s13 = scalar_lea.vmem %s4425_s4, %s2816_s18 }
  0x14   : > { %v2979_v5 = vld [vmem:[%s2970_s21] sm:$0xff]  ;;  %v690_v6 = vrot.slane %v2976_v4, %v2962_v2  ;;  %v697_v8 = vrot.slane %v2976_v4, %v2973_v3  ;;  %v298_v12 = vrot.slane %v2993_v11, %v2962_v2  ;;  %v704_v14 = vrot.slane %v2976_v4, %v2990_v10  ;;  %v3004_v16 = vld [vmem:[%s2970_s21 + $0x48] sm:$0xff]  ;;  %4428 = vst [vmem:[#allocation2_spill] sm:$0xff] %v3033_v29  ;;  %v3051_v37 = vld [vmem:[%s2970_s21 + $0x50] sm:$0xff] }
  0x15   : > { %v242_v7 = vrot.slane %v2979_v5, %v2962_v2  ;;  %v249_v9 = vrot.slane %v2979_v5, %v2973_v3  ;;  %v256_v13 = vrot.slane %v2979_v5, %v2990_v10  ;;  %v305_v15 = vrot.slane %v2993_v11, %v2973_v3  ;;  %v3065_v43 = vld [vmem:[%s2970_s21 + $0x18] sm:$0xff] }
  0x16   : > { %692 = vbcast.lane.b32.xlu1 %v690_v6, 256  ;;  %v753_v17 = vrot.slane %v3004_v16, %v2973_v3  ;;  %v746_v18 = vrot.slane %v3004_v16, %v2962_v2  ;;  %v312_v20 = vrot.slane %v2993_v11, %v2990_v10  ;;  %v263_v21 = vrot.slane %v2979_v5, %v3011_v19  ;;  %v3080_v50 = vld [vmem:[%s2970_s21 + $0x58] sm:$0xff] }
  0x17   : > { %244 = vbcast.lane.b32.xlu0 %v242_v7, 256  ;;  %v760_v22 = vrot.slane %v3004_v16, %v2990_v10  ;;  %v711_v23 = vrot.slane %v2976_v4, %v3011_v19  ;;  %v319_v25 = vrot.slane %v2993_v11, %v3011_v19  ;;  %v270_v26 = vrot.slane %v2979_v5, %v3022_v24 }
  0x18   : > { %v767_v27 = vrot.slane %v3004_v16, %v3011_v19  ;;  %v718_v28 = vrot.slane %v2976_v4, %v3022_v24  ;;  %v326_v30 = vrot.slane %v2993_v11, %v3022_v24  ;;  %v277_v31 = vrot.slane %v2979_v5, %v3033_v29 }
  0x19   : > { %v361_v33 = vrot.slane %v3040_v32, %v2973_v3  ;;  %v354_v34 = vrot.slane %v3040_v32, %v2962_v2  ;;  %v774_v35 = vrot.slane %v3004_v16, %v3022_v24  ;;  %v725_v36 = vrot.slane %v2976_v4, %v3033_v29 }
  0x1a   : > { %699 = vbcast.lane.b32.xlu1 %v697_v8, 256  ;;  %v809_v38 = vrot.slane %v3051_v37, %v2973_v3  ;;  %v802_v39 = vrot.slane %v3051_v37, %v2962_v2  ;;  %v333_v41 = vrot.slane %v2993_v11, %v3033_v29  ;;  %v284_v42 = vrot.slane %v2979_v5, %v3058_v40  ;;  %v3124_v8 = vld [vmem:[%s2970_s21 + $0x20] sm:$0xff] }
  0x1b   : > { %251 = vbcast.lane.b32.xlu0 %v249_v9, 256  ;;  %v410_v44 = vrot.slane %v3065_v43, %v2962_v2  ;;  %v368_v45 = vrot.slane %v3040_v32, %v2990_v10  ;;  %v732_v46 = vrot.slane %v2976_v4, %v3058_v40  ;;  %v417_v47 = vrot.slane %v3065_v43, %v2973_v3 }
  0x1c   : > { %v816_v48 = vrot.slane %v3051_v37, %v2990_v10  ;;  %v781_v49 = vrot.slane %v3004_v16, %v3033_v29  ;;  %v865_v51 = vrot.slane %v3080_v50, %v2973_v3  ;;  %v858_v52 = vrot.slane %v3080_v50, %v2962_v2 }
  0x1d   : > { %v340_v54 = vrot.slane %v2993_v11, %v3058_v40  ;;  %v291_v55 = vrot.slane %v2979_v5, %v3087_v53  ;;  %v424_v56 = vrot.slane %v3065_v43, %v2990_v10  ;;  %v375_v57 = vrot.slane %v3040_v32, %v3011_v19 }
  0x1e   : > { %300 = vbcast.lane.b32.xlu1 %v298_v12, 256  ;;  %v788_v58 = vrot.slane %v3004_v16, %v3058_v40  ;;  %v739_v59 = vrot.slane %v2976_v4, %v3087_v53  ;;  %v872_v60 = vrot.slane %v3080_v50, %v2990_v10  ;;  %v823_v61 = vrot.slane %v3051_v37, %v3011_v19  ;;  %v3131_v12 = vld [vmem:[%s2970_s21 + $0x60] sm:$0xff] }
  0x1f   : > { %258 = vbcast.lane.b32.xlu0 %v256_v13, 256  ;;  %v382_v62 = vrot.slane %v3040_v32, %v3022_v24  ;;  %v347_v63 = vrot.slane %v2993_v11, %v3087_v53  ;;  %v795_v0 = vrot.slane %v3004_v16, %v3087_v53  ;;  %v431_v1 = vrot.slane %v3065_v43, %v3011_v19 }
  0x20   : > { %v879_v4 = vrot.slane %v3080_v50, %v3011_v19  ;;  %v830_v5 = vrot.slane %v3051_v37, %v3022_v24  ;;  %v438_v6 = vrot.slane %v3065_v43, %v3022_v24  ;;  %v389_v7 = vrot.slane %v3040_v32, %v3033_v29 }
  0x21   : > { %v473_v9 = vrot.slane %v3124_v8, %v2973_v3  ;;  %v466_v11 = vrot.slane %v3124_v8, %v2962_v2  ;;  %v886_v13 = vrot.slane %v3080_v50, %v3022_v24  ;;  %v921_v16 = vrot.slane %v3131_v12, %v2973_v3 }
  0x22   : > { %706 = vbcast.lane.b32.xlu1 %v704_v14, 256  ;;  %v837_v14 = vrot.slane %v3051_v37, %v3033_v29 }
  0x23   : > { %307 = vbcast.lane.b32.xlu0 %v305_v15, 256  ;;  %v3138_v15 = vld [vmem:[%s2970_s21 + $0x28] sm:$0xff] }
  0x26   : > { %755 = vbcast.lane.b32.xlu1 %v753_v17, 256  ;;  %v3143_v17 = vld [vmem:[%s2970_s21 + $0x68] sm:$0xff] }
  0x27   : > { %748 = vbcast.lane.b32.xlu0 %v746_v18, 256  ;;  %v2288_v18 = vld [vmem:[%s4423_s2] sm:$0xff] }
  0x2a   : > { %314 = vbcast.lane.b32.xlu1 %v312_v20, 256  ;;  %v2289_v20 = vld [vmem:[%s4423_s2 + $0x8] sm:$0xff] }
  0x2b   : > { %265 = vbcast.lane.b32.xlu0 %v263_v21, 256  ;;  %v914_v21 = vrot.slane %v3131_v12, %v2962_v2 }
  0x2e   : > { %762 = vbcast.lane.b32.xlu1 %v760_v22, 256  ;;  %v445_v22 = vrot.slane %v3065_v43, %v3033_v29 }
  0x2f   : > { %713 = vbcast.lane.b32.xlu0 %v711_v23, 256  ;;  %v396_v23 = vrot.slane %v3040_v32, %v3058_v40 }
  0x32   : > { %321 = vbcast.lane.b32.xlu1 %v319_v25, 256  ;;  %v2890_v25 = vpack.c.bf16 %v2289_v20, %v2288_v18 }
  0x33   : > { %272 = vbcast.lane.b32.xlu0 %v270_v26, 256  ;;  %v522_v26 = vrot.slane %v3138_v15, %v2962_v2 }
  0x34   : > { %2891 = vmatprep.subr.bf16.mxu0 %v2890_v25  ;;  %2898 = vmatprep.subr.bf16.mxu1 %v2890_v25 }
  0x35   : > { %2893 = vmatpush3.bf16.msra.mxu0 %v2890_v25  ;;  %2900 = vmatpush3.bf16.msra.mxu1 %v2890_v25 }
  0x36   : > { %769 = vbcast.lane.b32.xlu1 %v767_v27, 256  ;;  %v480_v27 = vrot.slane %v3124_v8, %v2990_v10 }
  0x37   : > { %720 = vbcast.lane.b32.xlu0 %v718_v28, 256  ;;  %v844_v28 = vrot.slane %v3051_v37, %v3058_v40 }
  0x3a   : > { %328 = vbcast.lane.b32.xlu1 %v326_v30, 256  ;;  %v529_v30 = vrot.slane %v3138_v15, %v2973_v3 }
  0x3b   : > { %279 = vbcast.lane.b32.xlu0 %v277_v31, 256  ;;  %v928_v31 = vrot.slane %v3131_v12, %v2990_v10 }
  0x3e   : > { %363 = vbcast.lane.b32.xlu1 %v361_v33, 256  ;;  %v893_v33 = vrot.slane %v3080_v50, %v3033_v29 }
  0x3f   : > { %356 = vbcast.lane.b32.xlu0 %v354_v34, 256  ;;  %v977_v34 = vrot.slane %v3143_v17, %v2973_v3 }
  0x42   : > { %776 = vbcast.lane.b32.xlu1 %v774_v35, 256  ;;  %v2290_v35 = vld [vmem:[%s4423_s2 + $0x10] sm:$0xff] }
  0x43   : > { %727 = vbcast.lane.b32.xlu0 %v725_v36, 256  ;;  %v2291_v36 = vld [vmem:[%s4423_s2 + $0x18] sm:$0xff] }
  0x46   : > { %811 = vbcast.lane.b32.xlu1 %v809_v38, 256  ;;  %v970_v38 = vrot.slane %v3143_v17, %v2962_v2 }
  0x47   : > { %804 = vbcast.lane.b32.xlu0 %v802_v39, 256  ;;  %v452_v39 = vrot.slane %v3065_v43, %v3058_v40 }
  0x4a   : > { %335 = vbcast.lane.b32.xlu1 %v333_v41, 256  ;;  %v2894_v41 = vpack.c.bf16 %v2291_v36, %v2290_v35 }
  0x4b   : > { %286 = vbcast.lane.b32.xlu0 %v284_v42, 256  ;;  %v403_v42 = vrot.slane %v3040_v32, %v3087_v53 }
  0x4c   : > { %2895 = vmatprep.subr.bf16.mxu0 %v2894_v41  ;;  %2899 = vmatprep.subr.bf16.mxu1 %v2894_v41 }
  0x4d   : > { %2897 = vmatpush3.bf16.msra.mxu0 %v2894_v41  ;;  %2901 = vmatpush3.bf16.msra.mxu1 %v2894_v41 }
  0x4e   : > { %412 = vbcast.lane.b32.xlu1 %v410_v44, 256  ;;  %v536_v44 = vrot.slane %v3138_v15, %v2990_v10 }
  0x4f   : > { %370 = vbcast.lane.b32.xlu0 %v368_v45, 256  ;;  %v487_v45 = vrot.slane %v3124_v8, %v3011_v19 }
  0x52   : > { %734 = vbcast.lane.b32.xlu1 %v732_v46, 256  ;;  %v900_v46 = vrot.slane %v3080_v50, %v3058_v40 }
  0x53   : > { %419 = vbcast.lane.b32.xlu0 %v417_v47, 256  ;;  %v851_v47 = vrot.slane %v3051_v37, %v3087_v53 }
  0x56   : > { %818 = vbcast.lane.b32.xlu1 %v816_v48, 256  ;;  %v984_v48 = vrot.slane %v3143_v17, %v2990_v10 }
  0x57   : > { %783 = vbcast.lane.b32.xlu0 %v781_v49, 256  ;;  %v3199_v49 = vld [vmem:[%s2970_s21 + $0x30] sm:$0xff] }
  0x5a   : > { %867 = vbcast.lane.b32.xlu1 %v865_v51, 256  ;;  %v1199_v51 = vld [vmem:[%s3180_s8 + $0x200] sm:$0xff] }
  0x5b   : > { %860 = vbcast.lane.b32.xlu0 %v858_v52, 256  ;;  %v1135_v52 = vld [vmem:[%s3180_s8] sm:$0xff] }
  0x5e   : > { %342 = vbcast.lane.b32.xlu1 %v340_v54, 256  ;;  %v935_v54 = vrot.slane %v3131_v12, %v3011_v19 }
  0x5f   : > { %293 = vbcast.lane.b32.xlu0 %v291_v55, 256  ;;  %v494_v55 = vrot.slane %v3124_v8, %v3022_v24 }
  0x62   : > { %426 = vbcast.lane.b32.xlu1 %v424_v56, 256  ;;  %v459_v56 = vrot.slane %v3065_v43, %v3087_v53 }
  0x63   : > { %377 = vbcast.lane.b32.xlu0 %v375_v57, 256  ;;  %v907_v57 = vrot.slane %v3080_v50, %v3087_v53 }
  0x66   : > { %790 = vbcast.lane.b32.xlu1 %v788_v58, 256  ;;  %v543_v58 = vrot.slane %v3138_v15, %v3011_v19 }
  0x67   : > { %741 = vbcast.lane.b32.xlu0 %v739_v59, 256 }
  0x6a   : > { %874 = vbcast.lane.b32.xlu1 %v872_v60, 256 }
  0x6b   : > { %825 = vbcast.lane.b32.xlu0 %v823_v61, 256  ;;  %v3218_v61 = vld [vmem:[%s2970_s21 + $0x70] sm:$0xff] }
  0x6e   : > { %384 = vbcast.lane.b32.xlu1 %v382_v62, 256 }
  0x6f   : > { %349 = vbcast.lane.b32.xlu0 %v347_v63, 256 }
  0x72   : > { %797 = vbcast.lane.b32.xlu1 %v795_v0, 256 }
  0x73   : > { %433 = vbcast.lane.b32.xlu0 %v431_v1, 256 }
  0x76   : > { %881 = vbcast.lane.b32.xlu1 %v879_v4, 256 }
  0x77   : > { %832 = vbcast.lane.b32.xlu0 %v830_v5, 256 }
  0x7a   : > { %440 = vbcast.lane.b32.xlu1 %v438_v6, 256 }
  0x7b   : > { %391 = vbcast.lane.b32.xlu0 %v389_v7, 256  ;;  %v1207_v7 = vld [vmem:[%s3180_s8 + $0x240] sm:$0xff] }
  0x7e   : > { %475 = vbcast.lane.b32.xlu1 %v473_v9, 256  ;;  %v1144_v9 = vld [vmem:[%s3180_s8 + $0x48] sm:$0xff] }
  0x7f   : > { %468 = vbcast.lane.b32.xlu0 %v466_v11, 256  ;;  %v3231_v11 = vld [vmem:[%s2970_s21 + $0x38] sm:$0xff] }
  0x82   : > { %888 = vbcast.lane.b32.xlu1 %v886_v13, 256  ;;  %v1200_v13 = vld [vmem:[%s3180_s8 + $0x208] sm:$0xff] }
  0x83   : > { %839 = vbcast.lane.b32.xlu0 %v837_v14, 256  ;;  %v1136_v14 = vld [vmem:[%s3180_s8 + $0x8] sm:$0xff] }
  0x86   : > { %923 = vbcast.lane.b32.xlu1 %v921_v16, 256 }
  0x87   : > { %916 = vbcast.lane.b32.xlu0 %v914_v21, 256 }
  0x88   : > { %v693_v62 = vpop.permute.xlu1 %692 }
  0x89   : > { %v245_v63 = vpop.permute.xlu0 %244  ;;  %v1327_v5 = vmul.f32 %v1199_v51, %v693_v62  ;;  %v1143_v62 = vld [vmem:[%s3180_s8 + $0x40] sm:$0xff] }
  0x8a   : > { %v1263_v6 = vmul.f32 %v1135_v52, %v245_v63  ;;  %447 = vbcast.lane.b32.xlu1 %v445_v22, 256  ;;  %v3252_v63 = vld [vmem:[%s2970_s21 + $0x78] sm:$0xff]  ;;  %v1137_v52 = vld [vmem:[%s3180_s8 + $0x10] sm:$0xff] }
  0x8b   : > { %398 = vbcast.lane.b32.xlu0 %v396_v23, 256  ;;  %v1840_v21 = vsel %vm1391_vm0, %v1327_v5, 0.0 }
  0x8c   : > { %v1392_v25 = vsel %vm1391_vm0, %v1263_v6, 0.0  ;;  %v1841_v35 = vrot.slane %v1840_v21, 4  ;;  %v700_v41 = vpop.permute.xlu1 %699 }
  0x8d   : > { %v1393_v36 = vrot.slane %v1392_v25, 4  ;;  %v252_v51 = vpop.permute.xlu0 %251  ;;  %v1328_v5 = vmul.f32 %v1200_v13, %v700_v41 }
  0x8e   : > { %v1264_v6 = vmul.f32 %v1136_v14, %v252_v51  ;;  %v1842_v20 = vadd.f32 %v1841_v35, %v1840_v21  ;;  %524 = vbcast.lane.b32.xlu1 %v522_v26, 256  ;;  %v1201_v26 = vld [vmem:[%s3180_s8 + $0x210] sm:$0xff] }
  0x8f   : > { %v1394_v18 = vadd.f32 %v1393_v36, %v1392_v25  ;;  %482 = vbcast.lane.b32.xlu0 %v480_v27, 256  ;;  %v1847_v14 = vsel %vm1391_vm0, %v1328_v5, 0.0 }
  0x90   : > { %v1399_v41 = vsel %vm1391_vm0, %v1264_v6, 0.0  ;;  %v1848_v25 = vrot.slane %v1847_v14, 4  ;;  %v301_v27 = vpop.permute.xlu1 %300  ;;  %v1843_v13 = vrot.slane %v1842_v20, 2 }
  0x91   : > { %v1400_v35 = vrot.slane %v1399_v41, 4  ;;  %v259_v36 = vpop.permute.xlu0 %258  ;;  %v1395_v6 = vrot.slane %v1394_v18, 2  ;;  %v1271_v23 = vmul.f32 %v1143_v62, %v301_v27 }
  0x92   : > { %v1265_v22 = vmul.f32 %v1137_v52, %v259_v36  ;;  %v1849_v16 = vadd.f32 %v1848_v25, %v1847_v14  ;;  %846 = vbcast.lane.b32.xlu1 %v844_v28, 256  ;;  %v1208_v52 = vld [vmem:[%s3180_s8 + $0x248] sm:$0xff] }
  0x93   : > { %v1401_v21 = vadd.f32 %v1400_v35, %v1399_v41  ;;  %v1448_v5 = vsel %vm1391_vm0, %v1271_v23, 0.0  ;;  %531 = vbcast.lane.b32.xlu0 %v529_v30, 256  ;;  %v1844_v35 = vadd.f32 %v1843_v13, %v1842_v20  ;;  %v1396_v30 = vadd.f32 %v1395_v6, %v1394_v18 }
  0x94   : > { %v1406_v4 = vsel %vm1391_vm0, %v1265_v22, 0.0  ;;  %v1850_v62 = vrot.slane %v1849_v16, 2  ;;  %v707_v41 = vpop.permute.xlu1 %706  ;;  %v1449_v51 = vrot.slane %v1448_v5, 4 }
  0x95   : > { %v1402_v14 = vrot.slane %v1401_v21, 2  ;;  %v308_v25 = vpop.permute.xlu0 %307  ;;  %v1329_v27 = vmul.f32 %v1201_v26, %v707_v41  ;;  %v1407_v28 = vrot.slane %v1406_v4, 4 }
  0x96   : > { %v1272_v36 = vmul.f32 %v1144_v9, %v308_v25  ;;  %930 = vbcast.lane.b32.xlu1 %v928_v31, 256  ;;  %v1851_v20 = vadd.f32 %v1850_v62, %v1849_v16  ;;  %v1450_v1 = vadd.f32 %v1449_v51, %v1448_v5 }
  0x97   : > { %895 = vbcast.lane.b32.xlu0 %v893_v33, 256  ;;  %v1403_v13 = vadd.f32 %v1402_v14, %v1401_v21  ;;  %v1854_v26 = vsel %vm1391_vm0, %v1329_v27, 0.0  ;;  %v1397_v33 = vrot.slane %v1396_v30, 1  ;;  %v1408_v0 = vadd.f32 %v1407_v28, %v1406_v4  ;;  %v1145_v4 = vld [vmem:[%s3180_s8 + $0x50] sm:$0xff] }
  0x98   : > { %v1455_v22 = vsel %vm1391_vm0, %v1272_v36, 0.0  ;;  %v756_v41 = vpop.permute.xlu1 %755  ;;  %v1845_v36 = vrot.slane %v1844_v35, 1  ;;  %v1855_v62 = vrot.slane %v1854_v26, 4  ;;  %v1852_v51 = vrot.slane %v1851_v20, 1 }
  0x99   : > { %v1456_v6 = vrot.slane %v1455_v22, 4  ;;  %v749_v25 = vpop.permute.xlu0 %748  ;;  %v1336_v23 = vmul.f32 %v1208_v52, %v756_v41 }
  0x9a   : > { %v1335_v9 = vmul.f32 %v1207_v7, %v749_v25  ;;  %979 = vbcast.lane.b32.xlu1 %v977_v34, 256  ;;  %v1138_v7 = vld [vmem:[%s3180_s8 + $0x18] sm:$0xff]  ;;  %v1404_v34 = vrot.slane %v1403_v13, 1  ;;  %v1451_v25 = vrot.slane %v1450_v1, 2  ;;  %v1856_v31 = vadd.f32 %v1855_v62, %v1854_v26 }
  0x9b   : > { %v1457_v14 = vadd.f32 %v1456_v6, %v1455_v22  ;;  %v1903_v27 = vsel %vm1391_vm0, %v1336_v23, 0.0  ;;  %972 = vbcast.lane.b32.xlu0 %v970_v38, 256  ;;  %v1846_v23 = vadd.f32 %v1845_v36, %v1844_v35  ;;  %v1409_v38 = vrot.slane %v1408_v0, 2  ;;  %v1209_v35 = vld [vmem:[%s3180_s8 + $0x250] sm:$0xff] }
  0x9c   : > { %v1896_v18 = vsel %vm1391_vm0, %v1335_v9, 0.0  ;;  %v315_v5 = vpop.permute.xlu1 %314  ;;  %v1398_v9 = vadd.f32 %v1397_v33, %v1396_v30  ;;  %v1904_v6 = vrot.slane %v1903_v27, 4  ;;  %v1202_v30 = vld [vmem:[%s3180_s8 + $0x218] sm:$0xff]  ;;  %v1853_v36 = vadd.f32 %v1852_v51, %v1851_v20 }
  0x9d   : > { %v266_v28 = vpop.permute.xlu0 %265  ;;  %v1897_v41 = vrot.slane %v1896_v18, 4  ;;  %v1273_v21 = vmul.f32 %v1145_v4, %v315_v5  ;;  %v1458_v60 = vrot.slane %v1457_v14, 2  ;;  %v1405_v33 = vadd.f32 %v1404_v34, %v1403_v13  ;;  %v1146_v51 = vld [vmem:[%s3180_s8 + $0x58] sm:$0xff]  ;;  %v1139_v34 = vld [vmem:[%s3180_s8 + $0x20] sm:$0xff] }
  0x9e   : > { %v1266_v16 = vmul.f32 %v1138_v7, %v266_v28  ;;  %454 = vbcast.lane.b32.xlu1 %v452_v39, 256  ;;  %v1905_v52 = vadd.f32 %v1904_v6, %v1903_v27  ;;  %v1452_v27 = vadd.f32 %v1451_v25, %v1450_v1  ;;  %v1410_v28 = vadd.f32 %v1409_v38, %v1408_v0 }
  0x9f   : > { %v1898_v59 = vadd.f32 %v1897_v41, %v1896_v18  ;;  %405 = vbcast.lane.b32.xlu0 %v403_v42, 256  ;;  %v1462_v22 = vsel %vm1391_vm0, %v1273_v21, 0.0  ;;  %v1857_v20 = vrot.slane %v1856_v31, 2  ;;  %v1459_v13 = vadd.f32 %v1458_v60, %v1457_v14 }
  0xa0   : > { %v1413_v4 = vsel %vm1391_vm0, %v1266_v16, 0.0  ;;  %v763_v7 = vpop.permute.xlu1 %762  ;;  %v1906_v39 = vrot.slane %v1905_v52, 2  ;;  %v1463_v62 = vrot.slane %v1462_v22, 4  ;;  %v3357_v6 = vsel %vm2427_vm1, %v1853_v36, %v1846_v23 }
  0xa1   : > { %v714_v5 = vpop.permute.xlu0 %713  ;;  %v1899_v26 = vrot.slane %v1898_v59, 2  ;;  %v1414_v18 = vrot.slane %v1413_v4, 4  ;;  %v1337_v32 = vmul.f32 %v1209_v35, %v763_v7  ;;  %v3360_v0 = vsel %vm2427_vm1, %v1405_v33, %v1398_v9 }
  0xa2   : > { %v1330_v42 = vmul.f32 %v1202_v30, %v714_v5  ;;  %538 = vbcast.lane.b32.xlu1 %v536_v44, 256  ;;  %v1464_v21 = vadd.f32 %v1463_v62, %v1462_v22  ;;  %v1907_v14 = vadd.f32 %v1906_v39, %v1905_v52  ;;  %v1453_v9 = vrot.slane %v1452_v27, 1 }
  0xa3   : > { %v1415_v16 = vadd.f32 %v1414_v18, %v1413_v4  ;;  %489 = vbcast.lane.b32.xlu0 %v487_v45, 256  ;;  %v1910_v1 = vsel %vm1391_vm0, %v1337_v32, 0.0  ;;  %v1900_v22 = vadd.f32 %v1899_v26, %v1898_v59  ;;  %v1858_v36 = vadd.f32 %v1857_v20, %v1856_v31  ;;  %v1210_v59 = vld [vmem:[%s3180_s8 + $0x258] sm:$0xff]  ;;  %v1203_v18 = vld [vmem:[%s3180_s8 + $0x220] sm:$0xff] }
  0xa4   : > { %v1861_v44 = vsel %vm1391_vm0, %v1330_v42, 0.0  ;;  %v322_v41 = vpop.permute.xlu1 %321  ;;  %v1465_v25 = vrot.slane %v1464_v21, 2  ;;  %v1911_v45 = vrot.slane %v1910_v1, 4  ;;  %v1460_v33 = vrot.slane %v1459_v13, 1 }
  0xa5   : > { %v273_v60 = vpop.permute.xlu0 %272  ;;  %v1416_v38 = vrot.slane %v1415_v16, 2  ;;  %v1862_v35 = vrot.slane %v1861_v44, 4  ;;  %v1274_v30 = vmul.f32 %v1146_v51, %v322_v41  ;;  %v1908_v32 = vrot.slane %v1907_v14, 1 }
  0xa6   : > { %v1267_v23 = vmul.f32 %v1139_v34, %v273_v60  ;;  %902 = vbcast.lane.b32.xlu1 %v900_v46, 256  ;;  %v1466_v4 = vadd.f32 %v1465_v25, %v1464_v21  ;;  %v1912_v52 = vadd.f32 %v1911_v45, %v1910_v1  ;;  %v1411_v46 = vrot.slane %v1410_v28, 1  ;;  %v1147_v45 = vld [vmem:[%s3180_s8 + $0x60] sm:$0xff] }
  0xa7   : > { %853 = vbcast.lane.b32.xlu0 %v851_v47, 256  ;;  %v1863_v7 = vadd.f32 %v1862_v35, %v1861_v44  ;;  %v1469_v5 = vsel %vm1391_vm0, %v1274_v30, 0.0  ;;  %v1901_v31 = vrot.slane %v1900_v22, 1  ;;  %v1417_v20 = vadd.f32 %v1416_v38, %v1415_v16  ;;  %v1140_v30 = vld [vmem:[%s3180_s8 + $0x28] sm:$0xff] }
  0xa8   : > { %v1420_v39 = vsel %vm1391_vm0, %v1267_v23, 0.0  ;;  %v770_v26 = vpop.permute.xlu1 %769  ;;  %v1470_v42 = vrot.slane %v1469_v5, 4  ;;  %v1913_v21 = vrot.slane %v1912_v52, 2  ;;  %v1454_v51 = vadd.f32 %v1453_v9, %v1452_v27 }
  0xa9   : > { %v721_v62 = vpop.permute.xlu0 %720  ;;  %v1864_v37 = vrot.slane %v1863_v7, 2  ;;  %v1338_v47 = vmul.f32 %v1210_v59, %v770_v26  ;;  %v1421_v1 = vrot.slane %v1420_v39, 4  ;;  %v1859_v41 = vrot.slane %v1858_v36, 1 }
  0xaa   : > { %986 = vbcast.lane.b32.xlu1 %v984_v48, 256  ;;  %v1471_v34 = vadd.f32 %v1470_v42, %v1469_v5  ;;  %v1331_v44 = vmul.f32 %v1203_v18, %v721_v62  ;;  %v1461_v60 = vadd.f32 %v1460_v33, %v1459_v13  ;;  %v1467_v25 = vrot.slane %v1466_v4, 1 }
  0xab   : > { %937 = vbcast.lane.b32.xlu0 %v935_v54, 256  ;;  %v1917_v16 = vsel %vm1391_vm0, %v1338_v47, 0.0  ;;  %v1412_v23 = vadd.f32 %v1411_v46, %v1410_v28  ;;  %v1914_v59 = vadd.f32 %v1913_v21, %v1912_v52  ;;  %v1909_v9 = vadd.f32 %v1908_v32, %v1907_v14  ;;  %v1152_v46 = vld [vmem:[%s3180_s8 + $0x88] sm:$0xff]  ;;  %v1151_v21 = vld [vmem:[%s3180_s8 + $0x80] sm:$0xff] }
  0xac   : > { %v329_v38 = vpop.permute.xlu1 %328  ;;  %v1918_v48 = vrot.slane %v1917_v16, 4  ;;  %v1868_v27 = vsel %vm1391_vm0, %v1331_v44, 0.0  ;;  %v1902_v5 = vadd.f32 %v1901_v31, %v1900_v22  ;;  %v1418_v26 = vrot.slane %v1417_v20, 1 }
  0xad   : > { %v280_v35 = vpop.permute.xlu0 %279  ;;  %v1865_v62 = vadd.f32 %v1864_v37, %v1863_v7  ;;  %v1472_v54 = vrot.slane %v1471_v34, 2  ;;  %v1422_v13 = vadd.f32 %v1421_v1, %v1420_v39  ;;  %v1275_v33 = vmul.f32 %v1147_v45, %v329_v38 }
  0xae   : > { %496 = vbcast.lane.b32.xlu1 %v494_v55, 256  ;;  %v1268_v18 = vmul.f32 %v1140_v30, %v280_v35  ;;  %v3390_v28 = vadd.f32 %v1859_v41, %v1858_v36  ;;  %v2441_v14 = vsel %vm2427_vm1, %v1461_v60, %v1454_v51  ;;  %v1468_v22 = vadd.f32 %v1467_v25, %v1466_v4  ;;  %v1211_v4 = vld [vmem:[%s3180_s8 + $0x260] sm:$0xff] }
  0xaf   : > { %461 = vbcast.lane.b32.xlu0 %v459_v56, 256  ;;  %v1869_v52 = vrot.slane %v1868_v27, 4  ;;  %v1915_v55 = vrot.slane %v1914_v59, 1  ;;  %v1919_v31 = vadd.f32 %v1918_v48, %v1917_v16  ;;  %v1476_v39 = vsel %vm1391_vm0, %v1275_v33, 0.0 }
  0xb0   : > { %v364_v7 = vpop.permute.xlu1 %363  ;;  %v1427_v42 = vsel %vm1391_vm0, %v1268_v18, 0.0  ;;  %v2497_v43 = vsel %vm2427_vm1, %v1909_v9, %v1902_v5  ;;  %v1866_v56 = vrot.slane %v1865_v62, 1  ;;  %v1477_v36 = vrot.slane %v1476_v39, 4 }
  0xb1   : > { %v357_v32 = vpop.permute.xlu0 %356  ;;  %v3404_v37 = vsel %vm2429_vm2, %v1412_v23, %v3360_v0  ;;  %v3406_v47 = vadd.f32 %v1418_v26, %v1417_v20  ;;  %v3408_v51 = vadd.f32 %v1472_v54, %v1471_v34  ;;  %v1423_v1 = vrot.slane %v1422_v13, 2  ;;  %v1204_v23 = vld [vmem:[%s3180_s8 + $0x228] sm:$0xff]  ;;  %v1215_v54 = vld [vmem:[%s3180_s8 + $0x280] sm:$0xff] }
  0xb2   : > { %909 = vbcast.lane.b32.xlu1 %v907_v57, 256  ;;  %v1280_v44 = vmul.f32 %v1152_v46, %v364_v7  ;;  %v3414_v41 = vsel %vm2429_vm2, %v1468_v22, %v2441_v14  ;;  %v1870_v50 = vadd.f32 %v1869_v52, %v1868_v27  ;;  %v1428_v57 = vrot.slane %v1427_v42, 4  ;;  %v1216_v27 = vld [vmem:[%s3180_s8 + $0x288] sm:$0xff] }
  0xb3   : > { %545 = vbcast.lane.b32.xlu0 %v543_v58, 256  ;;  %4429 = vst [vmem:[#allocation3_spill] sm:$0xff] %v3414_v41  ;;  %v1279_v60 = vmul.f32 %v1151_v21, %v357_v32  ;;  %v1916_v20 = vadd.f32 %v1915_v55, %v1914_v59  ;;  %v1920_v34 = vrot.slane %v1919_v31, 2  ;;  %v3417_v45 = vadd.f32 %v1866_v56, %v1865_v62 }
  0xb4   : > { %v777_v0 = vpop.permute.xlu1 %776  ;;  %v1511_v16 = vsel %vm1391_vm0, %v1280_v44, 0.0  ;;  %v1478_v35 = vadd.f32 %v1477_v36, %v1476_v39  ;;  %v4430_v48 = vrot.slane %v3143_v17, %v3011_v19  ;;  %v1474_v9 = vrot.slane %v3408_v51, 1 }
  0xb5   : > { %v728_v25 = vpop.permute.xlu0 %727  ;;  %v1339_v38 = vmul.f32 %v1211_v4, %v777_v0  ;;  %v1512_v30 = vrot.slane %v1511_v16, 4  ;;  %v1504_v58 = vsel %vm1391_vm0, %v1279_v60, 0.0  ;;  %v1424_v59 = vadd.f32 %v1423_v1, %v1422_v13 }
  0xb6   : > { %993 = vbcast.lane.b32.xlu1 %v4430_v48, 256  ;;  %v1505_v5 = vrot.slane %v1504_v58, 4  ;;  %v4431_v62 = vrot.slane %v3131_v12, %v3022_v24  ;;  %v1871_v33 = vrot.slane %v1870_v50, 2  ;;  %v1429_v18 = vadd.f32 %v1428_v57, %v1427_v42 }
  0xb7   : > { %v1924_v26 = vsel %vm1391_vm0, %v1339_v38, 0.0  ;;  %v1513_v14 = vadd.f32 %v1512_v30, %v1511_v16  ;;  %v1921_v46 = vadd.f32 %v1920_v34, %v1919_v31  ;;  %v1332_v55 = vmul.f32 %v1204_v23, %v728_v25  ;;  %v1148_v38 = vld [vmem:[%s3180_s8 + $0x68] sm:$0xff] }
  0xb8   : > { %944 = vbcast.lane.b32.xlu0 %v4431_v62, 256  ;;  %v1925_v22 = vrot.slane %v1924_v26, 4  ;;  %v812_v52 = vpop.permute.xlu1 %811  ;;  %v1506_v32 = vadd.f32 %v1505_v5, %v1504_v58  ;;  %v1479_v13 = vrot.slane %v1478_v35, 2  ;;  %v4432_v4 = vrot.slane %v3138_v15, %v3022_v24  ;;  %v1141_v58 = vld [vmem:[%s3180_s8 + $0x30] sm:$0xff] }
  0xb9   : > { %v805_v7 = vpop.permute.xlu0 %804  ;;  %v1344_v39 = vmul.f32 %v1216_v27, %v812_v52  ;;  %v1514_v21 = vrot.slane %v1513_v14, 2  ;;  %v3435_v42 = vsel %vm2429_vm2, %v1916_v20, %v2497_v43  ;;  %v1875_v44 = vsel %vm1391_vm0, %v1332_v55, 0.0 }
  0xba   : > { %v1926_v56 = vadd.f32 %v1925_v22, %v1924_v26  ;;  %v1343_v36 = vmul.f32 %v1215_v54, %v805_v7  ;;  %552 = vbcast.lane.b32.xlu1 %v4432_v4, 256  ;;  %4433 = vst [vmem:[#allocation4_spill] sm:$0xff] %v3435_v42  ;;  %v1507_v1 = vrot.slane %v1506_v32, 2  ;;  %v4434_v57 = vrot.slane %v3124_v8, %v3033_v29 }
  0xbb   : > { %v1959_v31 = vsel %vm1391_vm0, %v1344_v39, 0.0  ;;  %v1425_v60 = vrot.slane %v1424_v59, 1  ;;  %v1872_v0 = vadd.f32 %v1871_v33, %v1870_v50  ;;  %v1430_v25 = vrot.slane %v1429_v18, 2 }
  0xbc   : > { %503 = vbcast.lane.b32.xlu0 %v4434_v57, 256  ;;  %v1876_v34 = vrot.slane %v1875_v44, 4  ;;  %v336_v16 = vpop.permute.xlu1 %335  ;;  %v1515_v23 = vadd.f32 %v1514_v21, %v1513_v14  ;;  %v1927_v43 = vrot.slane %v1926_v56, 2  ;;  %v1960_v20 = vrot.slane %v1959_v31, 4 }
  0xbd   : > { %v287_v30 = vpop.permute.xlu0 %286  ;;  %v1952_v48 = vsel %vm1391_vm0, %v1343_v36, 0.0  ;;  %v1922_v27 = vrot.slane %v1921_v46, 1  ;;  %v1480_v5 = vadd.f32 %v1479_v13, %v1478_v35  ;;  %v1508_v26 = vadd.f32 %v1507_v1, %v1506_v32  ;;  %v1159_v13 = vld [vmem:[%s3180_s8 + $0xc0] sm:$0xff] }
  0xbe   : > { %v1953_v62 = vrot.slane %v1952_v48, 4  ;;  %v4435_v54 = vrot.slane %v3199_v49, %v2973_v3  ;;  %v1877_v50 = vadd.f32 %v1876_v34, %v1875_v44  ;;  %v1961_v33 = vadd.f32 %v1960_v20, %v1959_v31  ;;  %v1153_v31 = vld [vmem:[%s3180_s8 + $0x90] sm:$0xff] }
  0xbf   : > { %v1276_v22 = vmul.f32 %v1148_v38, %v336_v16  ;;  %v1269_v52 = vmul.f32 %v1141_v58, %v287_v30  ;;  %v4436_v14 = vrot.slane %v3199_v49, %v2962_v2  ;;  %v3452_v7 = vadd.f32 %v1474_v9, %v3408_v51 }
  0xc0   : > { %587 = vbcast.lane.b32.xlu1 %v4435_v54, 256  ;;  %v1873_v55 = vrot.slane %v1872_v0, 1  ;;  %v1431_v35 = vadd.f32 %v1430_v25, %v1429_v18  ;;  %v1954_v32 = vadd.f32 %v1953_v62, %v1952_v48  ;;  %v413_v39 = vpop.permute.xlu1 %412  ;;  %v3455_v36 = vadd.f32 %v1425_v60, %v1424_v59  ;;  %v1205_v18 = vld [vmem:[%s3180_s8 + $0x230] sm:$0xff] }
  0xc1   : > { %580 = vbcast.lane.b32.xlu0 %v4436_v14, 256  ;;  %4437 = vst [vmem:[#allocation5_spill] sm:$0xff] %v3452_v7  ;;  %v371_v21 = vpop.permute.xlu0 %370  ;;  %v1516_v4 = vrot.slane %v1515_v23, 1  ;;  %v1928_v1 = vadd.f32 %v1927_v43, %v1926_v56  ;;  %v1483_v44 = vsel %vm1391_vm0, %v1276_v22, 0.0  ;;  %v3459_v57 = vadd.f32 %v1922_v27, %v1921_v46 }
  0xc2   : > { %v1481_v34 = vrot.slane %v1480_v5, 1  ;;  %v1509_v16 = vrot.slane %v1508_v26, 1  ;;  %v1484_v51 = vrot.slane %v1483_v44, 4  ;;  %v4439_v9 = vrot.slane %v3143_v17, %v3022_v24 }
  0xc3   : > { %4438 = vst [vmem:[#allocation6_spill] sm:$0xff] %v3459_v57  ;;  %v1878_v25 = vrot.slane %v1877_v50, 2  ;;  %v1962_v38 = vrot.slane %v1961_v33, 2  ;;  %v1434_v59 = vsel %vm1391_vm0, %v1269_v52, 0.0  ;;  %v1287_v60 = vmul.f32 %v1159_v13, %v413_v39 }
  0xc4   : > { %1000 = vbcast.lane.b32.xlu1 %v4439_v9, 256  ;;  %v4440_v56 = vrot.slane %v3131_v12, %v3033_v29  ;;  %v3469_v46 = vadd.f32 %v1873_v55, %v1872_v0  ;;  %v1432_v30 = vrot.slane %v1431_v35, 1  ;;  %v1955_v58 = vrot.slane %v1954_v32, 2  ;;  %v735_v20 = vpop.permute.xlu1 %734  ;;  %v1160_v9 = vld [vmem:[%s3180_s8 + $0xc8] sm:$0xff]  ;;  %v1217_v55 = vld [vmem:[%s3180_s8 + $0x290] sm:$0xff] }
  0xc5   : > { %v1281_v43 = vmul.f32 %v1153_v31, %v371_v21  ;;  %v420_v48 = vpop.permute.xlu0 %419  ;;  %v1517_v27 = vadd.f32 %v1516_v4, %v1515_v23  ;;  %v1929_v62 = vrot.slane %v1928_v1, 1  ;;  %v1560_v54 = vsel %vm1391_vm0, %v1287_v60, 0.0 }
  0xc6   : > { %951 = vbcast.lane.b32.xlu0 %v4440_v56, 256  ;;  %4441 = vst [vmem:[#allocation7_spill] sm:$0xff] %v3469_v46  ;;  %v1333_v22 = vmul.f32 %v1205_v18, %v735_v20  ;;  %v1510_v52 = vadd.f32 %v1509_v16, %v1508_v26  ;;  %v1485_v14 = vadd.f32 %v1484_v51, %v1483_v44  ;;  %v1435_v39 = vrot.slane %v1434_v59, 4 }
  0xc7   : > { %v1561_v13 = vrot.slane %v1560_v54, 4  ;;  %v4442_v0 = vrot.slane %v3218_v61, %v2973_v3  ;;  %v3477_v56 = vadd.f32 %v1481_v34, %v1480_v5  ;;  %v1879_v21 = vadd.f32 %v1878_v25, %v1877_v50 }
  0xc8   : > { %v1963_v31 = vadd.f32 %v1962_v38, %v1961_v33  ;;  %v1518_v23 = vsel %vm1391_vm0, %v1281_v43, 0.0  ;;  %v4444_v4 = vrot.slane %v3218_v61, %v2962_v2  ;;  %v3483_v26 = vadd.f32 %v1432_v30, %v1431_v35  ;;  %v819_v18 = vpop.permute.xlu1 %818  ;;  %v1212_v30 = vld [vmem:[%s3180_s8 + $0x268] sm:$0xff] }
  0xc9   : > { %1035 = vbcast.lane.b32.xlu1 %v4442_v0, 256  ;;  %4443 = vst [vmem:[#allocation8_spill] sm:$0xff] %v3477_v56  ;;  %v1956_v44 = vadd.f32 %v1955_v58, %v1954_v32  ;;  %v1562_v16 = vadd.f32 %v1561_v13, %v1560_v54  ;;  %v1519_v51 = vrot.slane %v1518_v23, 4  ;;  %v784_v60 = vpop.permute.xlu0 %783  ;;  %v3485_v20 = vadd.f32 %v1929_v62, %v1928_v1  ;;  %v1224_v58 = vld [vmem:[%s3180_s8 + $0x2c8] sm:$0xff] }
  0xca   : > { %1028 = vbcast.lane.b32.xlu0 %v4444_v4, 256  ;;  %v1882_v5 = vsel %vm1391_vm0, %v1333_v22, 0.0  ;;  %v1288_v50 = vmul.f32 %v1160_v9, %v420_v48  ;;  %v1345_v33 = vmul.f32 %v1217_v55, %v819_v18  ;;  %v3489_v34 = vsel %vm2427_vm1, %v1517_v27, %v1510_v52  ;;  %v1223_v27 = vld [vmem:[%s3180_s8 + $0x2c0] sm:$0xff] }
  0xcb   : > { %4445 = vst [vmem:[#allocation9_spill] sm:$0xff] %v3485_v20  ;;  %v1486_v25 = vrot.slane %v1485_v14, 2  ;;  %v1436_v38 = vadd.f32 %v1435_v39, %v1434_v59  ;;  %v1520_v35 = vadd.f32 %v1519_v51, %v1518_v23  ;;  %v4446_v32 = vrot.slane %v3138_v15, %v3033_v29 }
  0xcc   : > { %v1880_v43 = vrot.slane %v1879_v21, 1  ;;  %v1964_v1 = vrot.slane %v1963_v31, 1  ;;  %v1567_v62 = vsel %vm1391_vm0, %v1288_v50, 0.0  ;;  %v1966_v54 = vsel %vm1391_vm0, %v1345_v33, 0.0  ;;  %v868_v13 = vpop.permute.xlu1 %867 }
  0xcd   : > { %559 = vbcast.lane.b32.xlu1 %v4446_v32, 256  ;;  %v4447_v48 = vrot.slane %v3124_v8, %v3058_v40  ;;  %v1957_v22 = vrot.slane %v1956_v44, 1  ;;  %v1563_v59 = vrot.slane %v1562_v16, 2  ;;  %v1883_v52 = vrot.slane %v1882_v5, 4  ;;  %v861_v9 = vpop.permute.xlu0 %860 }
  0xce   : > { %v1568_v39 = vrot.slane %v1567_v62, 4  ;;  %v1521_v0 = vrot.slane %v1520_v35, 2  ;;  %v1967_v55 = vrot.slane %v1966_v54, 4  ;;  %v1340_v23 = vmul.f32 %v1212_v30, %v784_v60 }
  0xcf   : > { %510 = vbcast.lane.b32.xlu0 %v4447_v48, 256  ;;  %v1352_v4 = vmul.f32 %v1224_v58, %v868_v13  ;;  %v1487_v51 = vadd.f32 %v1486_v25, %v1485_v14  ;;  %v1437_v18 = vrot.slane %v1436_v38, 2  ;;  %v1351_v33 = vmul.f32 %v1223_v27, %v861_v9  ;;  %v1149_v27 = vld [vmem:[%s3180_s8 + $0x70] sm:$0xff]  ;;  %v1142_v13 = vld [vmem:[%s3180_s8 + $0x38] sm:$0xff] }
  0xd0   : > { %v1569_v50 = vadd.f32 %v1568_v39, %v1567_v62  ;;  %v4448_v32 = vrot.slane %v3231_v11, %v2962_v2  ;;  %v3505_v48 = vadd.f32 %v1880_v43, %v1879_v21  ;;  %v1968_v20 = vadd.f32 %v1967_v55, %v1966_v54  ;;  %v343_v62 = vpop.permute.xlu1 %342 }
  0xd1   : > { %v1931_v57 = vsel %vm1391_vm0, %v1340_v23, 0.0  ;;  %v2015_v42 = vsel %vm1391_vm0, %v1352_v4, 0.0  ;;  %v4450_v60 = vrot.slane %v3199_v49, %v2990_v10  ;;  %v1965_v14 = vadd.f32 %v1964_v1, %v1963_v31  ;;  %v294_v39 = vpop.permute.xlu0 %293 }
  0xd2   : > { %636 = vbcast.lane.b32.xlu1 %v4448_v32, 256  ;;  %4449 = vst [vmem:[#allocation10_spill] sm:$0xff] %v3505_v48  ;;  %v1958_v25 = vadd.f32 %v1957_v22, %v1956_v44  ;;  %v1564_v30 = vadd.f32 %v1563_v59, %v1562_v16  ;;  %v1884_v58 = vadd.f32 %v1883_v52, %v1882_v5  ;;  %v1570_v21 = vrot.slane %v1569_v50, 2  ;;  %v1218_v48 = vld [vmem:[%s3180_s8 + $0x298] sm:$0xff] }
  0xd3   : > { %594 = vbcast.lane.b32.xlu0 %v4450_v60, 256  ;;  %v1522_v9 = vadd.f32 %v1521_v0, %v1520_v35  ;;  %v2016_v43 = vrot.slane %v2015_v42, 4  ;;  %v2008_v54 = vsel %vm1391_vm0, %v1351_v33, 0.0  ;;  %v1488_v55 = vrot.slane %v1487_v51, 1 }
  0xd4   : > { %v3515_v23 = vadd.f32 %v1437_v18, %v1436_v38  ;;  %v1932_v4 = vrot.slane %v1931_v57, 4  ;;  %v2009_v32 = vrot.slane %v2008_v54, 4  ;;  %v4451_v31 = vrot.slane %v3131_v12, %v3058_v40  ;;  %v427_v0 = vpop.permute.xlu1 %426  ;;  %v1161_v18 = vld [vmem:[%s3180_s8 + $0xd0] sm:$0xff] }
  0xd5   : > { %v1969_v44 = vrot.slane %v1968_v20, 2  ;;  %v2017_v16 = vadd.f32 %v2016_v43, %v2015_v42  ;;  %v1277_v5 = vmul.f32 %v1149_v27, %v343_v62  ;;  %v1270_v1 = vmul.f32 %v1142_v13, %v294_v39  ;;  %v378_v33 = vpop.permute.xlu0 %377 }
  0xd6   : > { %958 = vbcast.lane.b32.xlu1 %v4451_v31, 256  ;;  %v4452_v35 = vrot.slane %v3231_v11, %v2973_v3  ;;  %v3524_v22 = vsel %vm2427_vm1, %v1965_v14, %v1958_v25  ;;  %v1565_v59 = vrot.slane %v1564_v30, 1  ;;  %v1885_v38 = vrot.slane %v1884_v58, 2 }
  0xd7   : > { %v2010_v52 = vadd.f32 %v2009_v32, %v2008_v54  ;;  %v1523_v60 = vrot.slane %v1522_v9, 1  ;;  %v1571_v56 = vadd.f32 %v1570_v21, %v1569_v50  ;;  %v2018_v31 = vrot.slane %v2017_v16, 2  ;;  %v1154_v32 = vld [vmem:[%s3180_s8 + $0x98] sm:$0xff] }
  0xd8   : > { %643 = vbcast.lane.b32.xlu0 %v4452_v35, 256  ;;  %v1441_v42 = vsel %vm1391_vm0, %v1270_v1, 0.0  ;;  %v3528_v62 = vadd.f32 %v1488_v55, %v1487_v51  ;;  %v1933_v39 = vadd.f32 %v1932_v4, %v1931_v57  ;;  %v4454_v25 = vrot.slane %v3218_v61, %v2990_v10  ;;  %v791_v1 = vpop.permute.xlu1 %790  ;;  %v1213_v35 = vld [vmem:[%s3180_s8 + $0x270] sm:$0xff] }
  0xd9   : > { %v2011_v14 = vrot.slane %v2010_v52, 2  ;;  %v1970_v13 = vadd.f32 %v1969_v44, %v1968_v20  ;;  %v2019_v43 = vadd.f32 %v2018_v31, %v2017_v16  ;;  %v1490_v50 = vsel %vm1391_vm0, %v1277_v5, 0.0  ;;  %v742_v20 = vpop.permute.xlu0 %741 }
  0xda   : > { %4453 = vst [vmem:[#allocation11_spill] sm:$0xff] %v3528_v62  ;;  %1042 = vbcast.lane.b32.xlu1 %v4454_v25, 256  ;;  %v1289_v21 = vmul.f32 %v1161_v18, %v427_v0  ;;  %v4455_v54 = vrot.slane %v3143_v17, %v3033_v29  ;;  %v3538_v51 = vadd.f32 %v1565_v59, %v1564_v30  ;;  %v1442_v4 = vrot.slane %v1441_v42, 4  ;;  %v1206_v18 = vld [vmem:[%s3180_s8 + $0x238] sm:$0xff] }
  0xdb   : > { %v3540_v55 = vadd.f32 %v1885_v38, %v1884_v58  ;;  %v2012_v57 = vadd.f32 %v2011_v14, %v2010_v52  ;;  %v3544_v44 = vadd.f32 %v1523_v60, %v1522_v9  ;;  %v1572_v16 = vrot.slane %v1571_v56, 1  ;;  %v1225_v38 = vld [vmem:[%s3180_s8 + $0x2d0] sm:$0xff] }
  0xdc   : > { %1007 = vbcast.lane.b32.xlu0 %v4455_v54, 256  ;;  %v2020_v5 = vrot.slane %v2019_v43, 1  ;;  %v1574_v0 = vsel %vm1391_vm0, %v1289_v21, 0.0  ;;  %v1934_v31 = vrot.slane %v1933_v39, 2  ;;  %v1491_v30 = vrot.slane %v1490_v50, 4  ;;  %v875_v41 = vpop.permute.xlu1 %874 }
  0xdd   : > { %v2013_v25 = vrot.slane %v2012_v57, 1  ;;  %v1575_v58 = vrot.slane %v1574_v0, 4  ;;  %v4456_v59 = vrot.slane %v3252_v63, %v2973_v3  ;;  %v1971_v52 = vrot.slane %v1970_v13, 1  ;;  %v826_v29 = vpop.permute.xlu0 %825 }
  0xde   : > { %v2021_v14 = vadd.f32 %v2020_v5, %v2019_v43  ;;  %v1282_v54 = vmul.f32 %v1154_v32, %v378_v33  ;;  %v1341_v9 = vmul.f32 %v1213_v35, %v791_v1  ;;  %v4457_v60 = vrot.slane %v3252_v63, %v2962_v2 }
  0xdf   : > { %1091 = vbcast.lane.b32.xlu1 %v4456_v59, 256  ;;  %v2014_v21 = vadd.f32 %v2013_v25, %v2012_v57  ;;  %v1443_v27 = vadd.f32 %v1442_v4, %v1441_v42  ;;  %v1576_v62 = vadd.f32 %v1575_v58, %v1574_v0  ;;  %v1334_v7 = vmul.f32 %v1206_v18, %v742_v20  ;;  %v1155_v4 = vld [vmem:[%s3180_s8 + $0xa0] sm:$0xff] }
  0xe0   : > { %1084 = vbcast.lane.b32.xlu0 %v4457_v60, 256  ;;  %v1573_v46 = vadd.f32 %v1572_v16, %v1571_v56  ;;  %v1525_v3 = vsel %vm1391_vm0, %v1282_v54, 0.0  ;;  %v1938_v59 = vsel %vm1391_vm0, %v1341_v9, 0.0  ;;  %v1353_v43 = vmul.f32 %v1225_v38, %v875_v41  ;;  %v385_v18 = vpop.permute.xlu1 %384 }
  0xe1   : > { %v3559_v33 = vsel %vm2427_vm1, %v2021_v14, %v2014_v21  ;;  %v1492_v32 = vadd.f32 %v1491_v30, %v1490_v50  ;;  %v1577_v2 = vrot.slane %v1576_v62, 2  ;;  %v1526_v57 = vrot.slane %v1525_v3, 4  ;;  %v350_v25 = vpop.permute.xlu0 %349  ;;  %v1150_v30 = vld [vmem:[%s3180_s8 + $0x78] sm:$0xff] }
  0xe2   : > { %v4458_v42 = vrot.slane %v3138_v15, %v3058_v40  ;;  %v1939_v1 = vrot.slane %v1938_v59, 4  ;;  %v1889_v56 = vsel %vm1391_vm0, %v1334_v7, 0.0  ;;  %v2022_v35 = vsel %vm1391_vm0, %v1353_v43, 0.0 }
  0xe3   : > { %v1346_v20 = vmul.f32 %v1218_v48, %v826_v29  ;;  %v4459_v41 = vrot.slane %v3124_v8, %v3087_v53  ;;  %v3570_v50 = vadd.f32 %v1934_v31, %v1933_v39  ;;  %v1444_v16 = vrot.slane %v1443_v27, 2 }
  0xe4   : > { %566 = vbcast.lane.b32.xlu1 %v4458_v42, 256  ;;  %v1578_v5 = vadd.f32 %v1577_v2, %v1576_v62  ;;  %v1890_v0 = vrot.slane %v1889_v56, 4  ;;  %v1972_v58 = vadd.f32 %v1971_v52, %v1970_v13  ;;  %v2023_v38 = vrot.slane %v2022_v35, 4  ;;  %v798_v2 = vpop.permute.xlu1 %797 }
  0xe5   : > { %517 = vbcast.lane.b32.xlu0 %v4459_v41, 256  ;;  %v1973_v7 = vsel %vm1391_vm0, %v1346_v20, 0.0  ;;  %v1283_v14 = vmul.f32 %v1155_v4, %v385_v18  ;;  %v1493_v29 = vrot.slane %v1492_v32, 2  ;;  %v1527_v54 = vadd.f32 %v1526_v57, %v1525_v3  ;;  %v434_v57 = vpop.permute.xlu0 %433 }
  0xe6   : > { %v1579_v48 = vrot.slane %v1578_v5, 1  ;;  %v1974_v8 = vrot.slane %v1973_v7, 4  ;;  %v4460_v39 = vrot.slane %v3231_v11, %v2990_v10  ;;  %v1940_v62 = vadd.f32 %v1939_v1, %v1938_v59 }
  0xe7   : > { %v2024_v31 = vadd.f32 %v2023_v38, %v2022_v35  ;;  %v1532_v9 = vsel %vm1391_vm0, %v1283_v14, 0.0  ;;  %v1278_v60 = vmul.f32 %v1150_v30, %v350_v25  ;;  %v4461_v13 = vrot.slane %v3199_v49, %v3011_v19 }
  0xe8   : > { %650 = vbcast.lane.b32.xlu1 %v4460_v39, 256  ;;  %v2455_v52 = vsel %vm2427_vm1, %v1573_v46, %v3538_v51  ;;  %v1445_v21 = vadd.f32 %v1444_v16, %v1443_v27  ;;  %v1580_v3 = vadd.f32 %v1579_v48, %v1578_v5  ;;  %v1891_v43 = vadd.f32 %v1890_v0, %v1889_v56  ;;  %v882_v25 = vpop.permute.xlu1 %881 }
  0xe9   : > { %601 = vbcast.lane.b32.xlu0 %v4461_v13, 256  ;;  %v2025_v42 = vrot.slane %v2024_v31, 2  ;;  %v1975_v4 = vadd.f32 %v1974_v8, %v1973_v7  ;;  %v1533_v59 = vrot.slane %v1532_v9, 4  ;;  %v1497_v1 = vsel %vm1391_vm0, %v1278_v60, 0.0  ;;  %v833_v30 = vpop.permute.xlu0 %832  ;;  %v1214_v8 = vld [vmem:[%s3180_s8 + $0x278] sm:$0xff] }
  0xea   : > { %v3587_v35 = vsel %vm2429_vm2, %v3544_v44, %v3489_v34  ;;  %v1887_v20 = vrot.slane %v3540_v55, 1  ;;  %v1494_v41 = vadd.f32 %v1493_v29, %v1492_v32  ;;  %v3591_v46 = vsel %vm2429_vm2, %v1580_v3, %v2455_v52 }
  0xeb   : > { %v4462_v27 = vrot.slane %v3143_v17, %v3058_v40  ;;  %v1528_v51 = vrot.slane %v1527_v54, 2  ;;  %v1941_v56 = vrot.slane %v1940_v62, 2  ;;  %v2026_v16 = vadd.f32 %v2025_v42, %v2024_v31 }
  0xec   : > { %v1498_v5 = vrot.slane %v1497_v1, 4  ;;  %v4463_v34 = vrot.slane %v3131_v12, %v3087_v53  ;;  %v3601_v44 = vsel %vm2429_vm2, %v1972_v58, %v3524_v22  ;;  %v1936_v32 = vrot.slane %v3570_v50, 1  ;;  %v1162_v12 = vld [vmem:[%s3180_s8 + $0xd8] sm:$0xff]  ;;  %v441_v42 = vpop.permute.xlu1 %440 }
  0xed   : > { %1014 = vbcast.lane.b32.xlu1 %v4462_v27, 256  ;;  %v1892_v0 = vrot.slane %v1891_v43, 2  ;;  %v1446_v18 = vrot.slane %v1445_v21, 1  ;;  %v2027_v38 = vrot.slane %v2026_v16, 1  ;;  %v1976_v7 = vrot.slane %v1975_v4, 2  ;;  %v1226_v27 = vld [vmem:[%s3180_s8 + $0x2d8] sm:$0xff] }
  0xee   : > { %965 = vbcast.lane.b32.xlu0 %v4463_v34, 256  ;;  %v1534_v14 = vadd.f32 %v1533_v59, %v1532_v9  ;;  %v4464_v29 = vrot.slane %v3515_v23, 1  ;;  %v1495_v39 = vrot.slane %v1494_v41, 1  ;;  %v1499_v31 = vadd.f32 %v1498_v5, %v1497_v1 }
  0xef   : > { %v1447_v60 = vadd.f32 %v1446_v18, %v1445_v21  ;;  %v2432_v22 = vsel %vm2431_vm3, %v3406_v47, %v3404_v37  ;;  %v4465_v58 = vrot.slane %v3252_v63, %v2990_v10  ;;  %v3615_v13 = vadd.f32 %v1528_v51, %v1527_v54  ;;  %v392_v54 = vpop.permute.xlu0 %391  ;;  %v1219_v51 = vld [vmem:[%s3180_s8 + $0x2a0] sm:$0xff] }
  0xf0   : > { %v1440_v48 = vadd.f32 %v4464_v29, %v3515_v23  ;;  %v3617_v9 = vadd.f32 %v1941_v56, %v1940_v62  ;;  %v2028_v23 = vadd.f32 %v2027_v38, %v2026_v16  ;;  %v2434_v52 = vsel %vm2433_vm4, %v3455_v36, %v2432_v22 }
  0xf1   : > { %1098 = vbcast.lane.b32.xlu1 %v4465_v58, 256  ;;  %v4466_v21 = vrot.slane %v3218_v61, %v3011_v19  ;;  %v1893_v3 = vadd.f32 %v1892_v0, %v1891_v43  ;;  %v2436_v37 = vsel %vm2435_vm5, %v3483_v26, %v2434_v52  ;;  %v1342_v10 = vmul.f32 %v1214_v8, %v798_v2 }
  0xf2   : > { %v1290_v47 = vmul.f32 %v1162_v12, %v434_v57  ;;  %v3628_v62 = vsel %vm2429_vm2, %v2028_v23, %v3559_v33  ;;  %v1977_v59 = vadd.f32 %v1976_v7, %v1975_v4  ;;  %v1535_v1 = vrot.slane %v1534_v14, 2  ;;  %v1163_v12 = vld [vmem:[%s3180_s8 + $0xe0] sm:$0xff]  ;;  %v1156_v23 = vld [vmem:[%s3180_s8 + $0xa8] sm:$0xff] }
  0xf3   : > { %1049 = vbcast.lane.b32.xlu0 %v4466_v21, 256  ;;  %v2438_v36 = vsel %vm2437_vm6, %v1440_v48, %v2436_v37  ;;  %v1500_v56 = vrot.slane %v1499_v31, 2  ;;  %v1945_v16 = vsel %vm1391_vm0, %v1342_v10, 0.0  ;;  %v4467_v2 = vrot.slane %v3199_v49, %v3022_v24  ;;  %v469_v7 = vpop.permute.xlu0 %468 }
  0xf4   : > { %v2440_v43 = vsel %vm2439_vm7, %v1447_v60, %v2438_v36  ;;  %v1581_v26 = vsel %vm1391_vm0, %v1290_v47, 0.0  ;;  %v3640_v33 = vadd.f32 %v1936_v32, %v3570_v50  ;;  %v3642_v57 = vadd.f32 %v1495_v39, %v1494_v41  ;;  %v476_v32 = vpop.permute.xlu1 %475  ;;  %v1168_v39 = vld [vmem:[%s3180_s8 + $0x108] sm:$0xff] }
  0xf5   : > { %608 = vbcast.lane.b32.xlu1 %v4467_v2, 256  ;;  %2866 = vmatprep.mubr.msk.f32.mxu0 %vm1391_vm0, %v2440_v43  ;;  %v1946_v4 = vrot.slane %v1945_v16, 4  ;;  %v1582_v5 = vrot.slane %v1581_v26, 4  ;;  %v4468_v34 = vrot.slane %v3138_v15, %v3087_v53  ;;  %v1530_v0 = vrot.slane %v3615_v13, 1 }
  0xf6   : > { %v1943_v18 = vrot.slane %v3617_v9, 1  ;;  %v1354_v38 = vmul.f32 %v1226_v27, %v882_v25  ;;  %v1347_v50 = vmul.f32 %v1219_v51, %v833_v30  ;;  %v1978_v41 = vrot.slane %v1977_v59, 1 }
  0xf7   : > { %573 = vbcast.lane.b32.xlu0 %v4468_v34, 256  ;;  %v1947_v29 = vadd.f32 %v1946_v4, %v1945_v16  ;;  %v1583_v48 = vadd.f32 %v1582_v5, %v1581_v26  ;;  %v1894_v8 = vrot.slane %v1893_v3, 1  ;;  %v1536_v60 = vadd.f32 %v1535_v1, %v1534_v14  ;;  %v840_v36 = vpop.permute.xlu0 %839  ;;  %v4474_v34 = vld [vmem:[#allocation10_spill] sm:$0xff] }
  0xf8   : > { %v1501_v22 = vadd.f32 %v1500_v56, %v1499_v31  ;;  %v2029_v15 = vsel %vm1391_vm0, %v1354_v38, 0.0  ;;  %v1980_v58 = vsel %vm1391_vm0, %v1347_v50, 0.0  ;;  %v4469_v52 = vrot.slane %v3143_v17, %v3087_v53  ;;  %v889_v17 = vpop.permute.xlu1 %888 }
  0xf9   : > { %v1948_v25 = vrot.slane %v1947_v29, 2  ;;  %v1584_v30 = vrot.slane %v1583_v48, 2  ;;  %v2030_v21 = vrot.slane %v2029_v15, 4  ;;  %v1981_v37 = vrot.slane %v1980_v58, 4 }
  0xfa   : > { %1021 = vbcast.lane.b32.xlu1 %v4469_v52, 256  ;;  %v4470_v10 = vrot.slane %v3231_v11, %v3011_v19  ;;  %v1888_v14 = vadd.f32 %v1887_v20, %v3540_v55  ;;  %v2491_v31 = vsel %vm2429_vm2, %v3390_v28, %v3357_v6  ;;  %v1291_v47 = vmul.f32 %v1163_v12, %v441_v42  ;;  %v4476_v52 = vld [vmem:[#allocation2_spill] sm:$0xff] }
  0xfb   : > { %v1296_v1 = vmul.f32 %v1168_v39, %v476_v32  ;;  %v1949_v27 = vadd.f32 %v1948_v25, %v1947_v29  ;;  %v1895_v51 = vadd.f32 %v1894_v8, %v1893_v3  ;;  %v2492_v56 = vsel %vm2431_vm3, %v3417_v45, %v2491_v31  ;;  %v4472_v3 = vld [vmem:[#allocation7_spill] sm:$0xff]  ;;  %v1167_v32 = vld [vmem:[%s3180_s8 + $0x100] sm:$0xff] }
  0xfc   : > { %657 = vbcast.lane.b32.xlu0 %v4470_v10, 256  ;;  %v1284_v43 = vmul.f32 %v1156_v23, %v392_v54  ;;  %v1585_v16 = vadd.f32 %v1584_v30, %v1583_v48  ;;  %v2031_v26 = vadd.f32 %v2030_v21, %v2029_v15  ;;  %v1588_v2 = vsel %vm1391_vm0, %v1291_v47, 0.0  ;;  %v1220_v10 = vld [vmem:[%s3180_s8 + $0x2a8] sm:$0xff] }
  0xfd   : > { %v1623_v55 = vsel %vm1391_vm0, %v1296_v1, 0.0  ;;  %v4471_v6 = vrot.slane %v3252_v63, %v3011_v19  ;;  %v1531_v28 = vadd.f32 %v1530_v0, %v3615_v13  ;;  %v1979_v20 = vadd.f32 %v1978_v41, %v1977_v59  ;;  %v924_v19 = vpop.permute.xlu1 %923  ;;  %v917_v63 = vpop.permute.xlu0 %916 }
  0xfe   : > { %v1982_v42 = vadd.f32 %v1981_v37, %v1980_v58  ;;  %v2493_v4 = vsel %vm2433_vm4, %v4472_v3, %v2492_v56  ;;  %v4473_v45 = vrot.slane %v3218_v61, %v3022_v24  ;;  %v1537_v54 = vrot.slane %v1536_v60, 1  ;;  %v4478_v56 = vld [vmem:[#allocation3_spill] sm:$0xff] }
  0xff   : > { %1105 = vbcast.lane.b32.xlu1 %v4471_v6, 256  ;;  %v1502_v5 = vrot.slane %v1501_v22, 1  ;;  %v2494_v38 = vsel %vm2435_vm5, %v4474_v34, %v2493_v4  ;;  %v1624_v50 = vrot.slane %v1623_v55, 4  ;;  %v1950_v29 = vrot.slane %v1949_v27, 1  ;;  %v4481_v4 = vld [vmem:[#allocation11_spill] sm:$0xff] }
 0x100   : > { %1056 = vbcast.lane.b32.xlu0 %v4473_v45, 256  ;;  %v2495_v13 = vsel %vm2437_vm6, %v1888_v14, %v2494_v38  ;;  %v1589_v59 = vrot.slane %v1588_v2, 4  ;;  %v1539_v0 = vsel %vm1391_vm0, %v1284_v43, 0.0  ;;  %v1586_v41 = vrot.slane %v1585_v16, 1  ;;  %v4479_v43 = vld [vmem:[#allocation5_spill] sm:$0xff] }
 0x101   : > { %v2032_v61 = vrot.slane %v2031_v26, 2  ;;  %v2496_v48 = vsel %vm2439_vm7, %v1895_v51, %v2495_v13  ;;  %v1625_v8 = vadd.f32 %v1624_v50, %v1623_v55  ;;  %v4475_v12 = vrot.slane %v3231_v11, %v3022_v24  ;;  %v448_v14 = vpop.permute.xlu1 %447 }
 0x102   : > { %v3691_v39 = vsel %vm2431_vm3, %v1531_v28, %v3587_v35  ;;  %v1944_v15 = vadd.f32 %v1943_v18, %v3617_v9  ;;  %v1983_v58 = vrot.slane %v1982_v42, 2  ;;  %2878 = vmatprep.mubr.msk.f32.mxu1 %vm1391_vm0, %v2496_v48  ;;  %v1295_v23 = vmul.f32 %v1167_v32, %v469_v7  ;;  %v1227_v35 = vld [vmem:[%s3180_s8 + $0x2e0] sm:$0xff]  ;;  %v3706_v9 = vpop.permute.xlu0 %398  ;;  %v4482_v32 = vld [vmem:[#allocation4_spill] sm:$0xff]  ;;  %v4484_v48 = vld [vmem:[#allocation9_spill] sm:$0xff] }
 0x103   : > { %664 = vbcast.lane.b32.xlu1 %v4475_v12, 256  ;;  %v4477_v25 = vrot.slane %v3199_v49, %v4476_v52  ;;  %v3700_v30 = vsel %vm2431_vm3, %v1979_v20, %v3601_v44  ;;  %v3702_v11 = vadd.f32 %v1537_v54, %v1536_v60  ;;  %v1540_v21 = vrot.slane %v1539_v0, 4 }
 0x104   : > { %v1626_v37 = vrot.slane %v1625_v8, 2  ;;  %v1503_v18 = vadd.f32 %v1502_v5, %v1501_v22  ;;  %v1951_v31 = vadd.f32 %v1950_v29, %v1949_v27  ;;  %v1590_v7 = vadd.f32 %v1589_v59, %v1588_v2  ;;  %v1231_v5 = vld [vmem:[%s3180_s8 + $0x300] sm:$0xff]  ;;  %v1164_v59 = vld [vmem:[%s3180_s8 + $0xe8] sm:$0xff] }
 0x105   : > { %615 = vbcast.lane.b32.xlu0 %v4477_v25, 256  ;;  %v1616_v47 = vsel %vm1391_vm0, %v1295_v23, 0.0  ;;  %v1587_v49 = vadd.f32 %v1586_v41, %v1585_v16  ;;  %v3709_v1 = vadd.f32 %v2032_v61, %v2031_v26  ;;  %v3711_v60 = vadd.f32 %v1983_v58, %v1982_v42  ;;  %v4480_v16 = vld [vmem:[#allocation8_spill] sm:$0xff]  ;;  %v3720_v20 = vpop.permute.xlu1 %524  ;;  %v4483_v29 = vld [vmem:[#allocation6_spill] sm:$0xff] }
 0x106   : > { %v1627_v51 = vadd.f32 %v1626_v37, %v1625_v8  ;;  %v1617_v44 = vrot.slane %v1616_v47, 4  ;;  %v2443_v55 = vsel %vm2431_vm3, %v4479_v43, %v4478_v56  ;;  %v1355_v6 = vmul.f32 %v1227_v35, %v889_v17  ;;  %v3722_v3 = vpop.permute.xlu0 %482 }
 0x107   : > { %v1348_v28 = vmul.f32 %v1220_v10, %v840_v36  ;;  %v3716_v22 = vadd.f32 %v1540_v21, %v1539_v0  ;;  %v2444_v26 = vsel %vm2433_vm4, %v4480_v16, %v2443_v55  ;;  %v1591_v42 = vrot.slane %v1590_v7, 2  ;;  %v1232_v36 = vld [vmem:[%s3180_s8 + $0x308] sm:$0xff]  ;;  %v3759_v55 = vld [vmem:[%s2970_s21 + $0x78] sm:$0xff] }
 0x108   : > { %v1628_v27 = vrot.slane %v1627_v51, 1  ;;  %v1618_v2 = vadd.f32 %v1617_v44, %v1616_v47  ;;  %v2445_v45 = vsel %vm2435_vm5, %v4481_v4, %v2444_v26  ;;  %v2036_v54 = vsel %vm1391_vm0, %v1355_v6, 0.0  ;;  %v1157_v4 = vld [vmem:[%s3180_s8 + $0xb0] sm:$0xff] }
 0x109   : > { %v1987_v17 = vsel %vm1391_vm0, %v1348_v28, 0.0  ;;  %v2446_v50 = vsel %vm2437_vm6, %v3642_v57, %v2445_v45  ;;  %v2499_v13 = vsel %vm2431_vm3, %v4483_v29, %v4482_v32  ;;  %v2037_v41 = vrot.slane %v2036_v54, 4  ;;  %v3742_v25 = vpop.permute.xlu1 %846 }
 0x10a   : > { %v1629_v34 = vadd.f32 %v1628_v27, %v1627_v51  ;;  %v1619_v38 = vrot.slane %v1618_v2, 2  ;;  %v2447_v0 = vsel %vm2439_vm7, %v1503_v18, %v2446_v50  ;;  %v1988_v61 = vrot.slane %v1987_v17, 4  ;;  %v3745_v18 = vpop.permute.xlu0 %531 }
 0x10b   : > { %v2500_v8 = vsel %vm2433_vm4, %v4484_v48, %v2499_v13  ;;  %2867 = vmatmul.mubr.msk.f32.vlgmr.msra.gmra.mrb[0].mxu0 %vm1391_vm0, %v2447_v0  ;;  %v1360_v23 = vmul.f32 %v1232_v36, %v924_v19  ;;  %v1359_v57 = vmul.f32 %v1231_v5, %v917_v63  ;;  %v2038_v21 = vadd.f32 %v2037_v41, %v2036_v54 }
 0x10c   : > { %v1620_v12 = vadd.f32 %v1619_v38, %v1618_v2  ;;  %v2501_v58 = vsel %vm2435_vm5, %v3640_v33, %v2500_v8  ;;  %v1989_v37 = vadd.f32 %v1988_v61, %v1987_v17  ;;  %v1292_v10 = vmul.f32 %v1164_v59, %v448_v14 }
 0x10d   : > { %v2502_v35 = vsel %vm2437_vm6, %v1944_v15, %v2501_v58  ;;  %v2071_v44 = vsel %vm1391_vm0, %v1360_v23, 0.0  ;;  %v2064_v56 = vsel %vm1391_vm0, %v1359_v57, 0.0  ;;  %v2034_v33 = vrot.slane %v3709_v1, 1  ;;  %v3763_v28 = vpop.permute.xlu1 %930  ;;  %v1176_v57 = vld [vmem:[%s3180_s8 + $0x148] sm:$0xff] }
 0x10e   : > { %v1621_v47 = vrot.slane %v1620_v12, 1  ;;  %v2503_v51 = vsel %vm2439_vm7, %v1951_v31, %v2502_v35  ;;  %v1985_v19 = vrot.slane %v3711_v60, 1  ;;  %v2072_v63 = vrot.slane %v2071_v44, 4  ;;  %v3771_v45 = vpop.permute.xlu0 %895 }
 0x10f   : > { %2879 = vmatmul.mubr.msk.f32.vlgmr.msra.gmra.mrb[0].mxu1 %vm1391_vm0, %v2503_v51  ;;  %v2065_v15 = vrot.slane %v2064_v56, 4  ;;  %v3755_v14 = vsel %vm2431_vm3, %v1587_v49, %v3591_v46  ;;  %v1542_v31 = vrot.slane %v3716_v22, 2  ;;  %v1110_v6 = vrot.slane %v3759_v55, %v3022_v24  ;;  %v1175_v46 = vld [vmem:[%s3180_s8 + $0x140] sm:$0xff]  ;;  %v1169_v49 = vld [vmem:[%s3180_s8 + $0x110] sm:$0xff] }
 0x110   : > { %v1622_v43 = vadd.f32 %v1621_v47, %v1620_v12  ;;  %v3765_v27 = vadd.f32 %v1591_v42, %v1590_v7  ;;  %v2073_v2 = vadd.f32 %v2072_v63, %v2071_v44  ;;  %v1595_v26 = vsel %vm1391_vm0, %v1292_v10, 0.0  ;;  %v3777_v24 = vld [vmem:[%s2970_s21 + $0x70] sm:$0xff] }
 0x111   : > { %v2066_v16 = vadd.f32 %v2065_v15, %v2064_v56  ;;  %v2039_v17 = vrot.slane %v2038_v21, 2  ;;  %v1990_v36 = vrot.slane %v1989_v37, 2  ;;  %1112 = vbcast.lane.b32.xlu1 %v1110_v6, 256  ;;  %v1061_v7 = vrot.slane %v3777_v24, %v4476_v52  ;;  %v3788_v59 = vpop.permute.xlu1 %979  ;;  %v1221_v6 = vld [vmem:[%s3180_s8 + $0x2b0] sm:$0xff] }
 0x112   : > { %v3774_v54 = vsel %vm2427_vm1, %v1629_v34, %v1622_v43  ;;  %v2035_v42 = vadd.f32 %v2034_v33, %v3709_v1  ;;  %v3783_v5 = vadd.f32 %v1985_v19, %v3711_v60  ;;  %v2074_v38 = vrot.slane %v2073_v2, 2  ;;  %v3792_v61 = vpop.permute.xlu0 %972 }
 0x113   : > { %v2067_v50 = vrot.slane %v2066_v16, 2  ;;  %v1596_v32 = vrot.slane %v1595_v26, 4  ;;  %v1285_v29 = vmul.f32 %v1157_v4, %v3706_v9  ;;  %1063 = vbcast.lane.b32.xlu0 %v1061_v7, 256  ;;  %v1303_v34 = vmul.f32 %v1175_v46, %v3720_v20 }
 0x114   : > { %v1297_v13 = vmul.f32 %v1169_v49, %v3722_v3  ;;  %v1593_v0 = vrot.slane %v3765_v27, 1  ;;  %v1543_v1 = vadd.f32 %v1542_v31, %v3716_v22  ;;  %v2075_v60 = vadd.f32 %v2074_v38, %v2073_v2  ;;  %v3799_v22 = vld [vmem:[%s2970_s21 + $0x38] sm:$0xff]  ;;  %v1233_v49 = vld [vmem:[%s3180_s8 + $0x310] sm:$0xff] }
 0x115   : > { %v2068_v41 = vadd.f32 %v2067_v50, %v2066_v16  ;;  %v2040_v48 = vadd.f32 %v2039_v17, %v2038_v21  ;;  %v1991_v9 = vadd.f32 %v1990_v36, %v1989_v37  ;;  %v1672_v8 = vsel %vm1391_vm0, %v1303_v34, 0.0  ;;  %v3804_v21 = vld [vmem:[%s2970_s21 + $0x30] sm:$0xff]  ;;  %v3808_v51 = vpop.permute.xlu1 %454 }
 0x116   : > { %v1630_v20 = vsel %vm1391_vm0, %v1297_v13, 0.0  ;;  %v2076_v12 = vrot.slane %v2075_v60, 1  ;;  %v1673_v58 = vrot.slane %v1672_v8, 4  ;;  %v1597_v35 = vadd.f32 %v1596_v32, %v1595_v26  ;;  %v3810_v63 = vpop.permute.xlu0 %405 }
 0x117   : > { %v2069_v3 = vrot.slane %v2068_v41, 1  ;;  %v1631_v23 = vrot.slane %v1630_v20, 4  ;;  %v1546_v10 = vsel %vm1391_vm0, %v1285_v29, 0.0  ;;  %v669_v47 = vrot.slane %v3799_v22, %v4476_v52 }
 0x118   : > { %v620_v37 = vrot.slane %v3804_v21, %v3058_v40  ;;  %v2077_v44 = vadd.f32 %v2076_v12, %v2075_v60  ;;  %v1674_v33 = vadd.f32 %v1673_v58, %v1672_v8  ;;  %v1544_v15 = vrot.slane %v1543_v1, 1  ;;  %v1239_v12 = vld [vmem:[%s3180_s8 + $0x340] sm:$0xff] }
 0x119   : > { %v2070_v56 = vadd.f32 %v2069_v3, %v2068_v41  ;;  %v1632_v19 = vadd.f32 %v1631_v23, %v1630_v20  ;;  %v2041_v31 = vrot.slane %v2040_v48, 1  ;;  %v1992_v43 = vrot.slane %v1991_v9, 1  ;;  %671 = vbcast.lane.b32.xlu1 %v669_v47, 256  ;;  %v1228_v20 = vld [vmem:[%s3180_s8 + $0x2e8] sm:$0xff] }
 0x11a   : > { %622 = vbcast.lane.b32.xlu0 %v620_v37, 256  ;;  %v1304_v2 = vmul.f32 %v1176_v57, %v3745_v18  ;;  %v1675_v26 = vrot.slane %v1674_v33, 2  ;;  %v1117_v46 = vrot.slane %v3759_v55, %v4476_v52  ;;  %v3822_v17 = vsel %vm2431_vm3, %v2035_v42, %v3628_v62  ;;  %v3828_v18 = vpop.permute.xlu1 %538  ;;  %v3831_v34 = vpop.permute.xlu0 %489 }
 0x11b   : > { %v3815_v16 = vsel %vm2427_vm1, %v2077_v44, %v2070_v56  ;;  %v1633_v4 = vrot.slane %v1632_v19, 2  ;;  %v3825_v36 = vadd.f32 %v1593_v0, %v3765_v27  ;;  %v1547_v7 = vrot.slane %v1546_v10, 4 }
 0x11c   : > { %v1679_v38 = vsel %vm1391_vm0, %v1304_v2, 0.0  ;;  %v1598_v50 = vrot.slane %v1597_v35, 2  ;;  %v1349_v52 = vmul.f32 %v1221_v6, %v3742_v25  ;;  %v3833_v62 = vadd.f32 %v1544_v15, %v1543_v1  ;;  %v1240_v25 = vld [vmem:[%s3180_s8 + $0x348] sm:$0xff] }
 0x11d   : > { %v1634_v32 = vadd.f32 %v1633_v4, %v1632_v19  ;;  %v1680_v29 = vrot.slane %v1679_v38, 4  ;;  %v3835_v42 = vadd.f32 %v2041_v31, %v2040_v48  ;;  %1119 = vbcast.lane.b32.xlu1 %v1117_v46, 256  ;;  %v1068_v27 = vrot.slane %v3777_v24, %v3058_v40  ;;  %v1165_v31 = vld [vmem:[%s3180_s8 + $0xf0] sm:$0xff]  ;;  %v1158_v46 = vld [vmem:[%s3180_s8 + $0xb8] sm:$0xff] }
 0x11e   : > { %v1361_v13 = vmul.f32 %v1233_v49, %v3763_v28  ;;  %v3840_v0 = vadd.f32 %v1992_v43, %v1991_v9  ;;  %v1676_v60 = vadd.f32 %v1675_v26, %v1674_v33  ;;  %v3845_v3 = vadd.f32 %v1547_v7, %v1546_v10  ;;  %v3852_v28 = vpop.permute.xlu1 %902  ;;  %v3857_v10 = vpop.permute.xlu0 %853 }
 0x11f   : > { %v1635_v41 = vrot.slane %v1634_v32, 1  ;;  %v1681_v8 = vadd.f32 %v1680_v29, %v1679_v38  ;;  %1070 = vbcast.lane.b32.xlu0 %v1068_v27, 256  ;;  %v676_v48 = vrot.slane %v3799_v22, %v3058_v40  ;;  %v627_v58 = vrot.slane %v3804_v21, %v3087_v53 }
 0x120   : > { %v2078_v1 = vsel %vm1391_vm0, %v1361_v13, 0.0  ;;  %v3854_v9 = vadd.f32 %v1598_v50, %v1597_v35  ;;  %v1994_v57 = vsel %vm1391_vm0, %v1349_v52, 0.0  ;;  %v1356_v44 = vmul.f32 %v1228_v20, %v3771_v45 }
 0x121   : > { %v1636_v23 = vadd.f32 %v1635_v41, %v1634_v32  ;;  %v1682_v47 = vrot.slane %v1681_v8, 2  ;;  %v2079_v37 = vrot.slane %v2078_v1, 4  ;;  %678 = vbcast.lane.b32.xlu1 %v676_v48, 256  ;;  %v1368_v56 = vmul.f32 %v1240_v25, %v3788_v59 }
 0x122   : > { %v1367_v33 = vmul.f32 %v1239_v12, %v3792_v61  ;;  %v1677_v21 = vrot.slane %v1676_v60, 1  ;;  %v1124_v15 = vrot.slane %v3759_v55, %v3058_v40  ;;  %v1549_v43 = vrot.slane %v3845_v3, 2  ;;  %v3872_v61 = vpop.permute.xlu1 %986  ;;  %v3875_v49 = vpop.permute.xlu0 %937 }
 0x123   : > { %v3864_v35 = vsel %vm2429_vm2, %v1636_v23, %v3774_v54  ;;  %v1683_v19 = vadd.f32 %v1682_v47, %v1681_v8  ;;  %v2080_v6 = vadd.f32 %v2079_v37, %v2078_v1  ;;  %629 = vbcast.lane.b32.xlu0 %v627_v58, 256  ;;  %v2127_v45 = vsel %vm1391_vm0, %v1368_v56, 0.0  ;;  %v1177_v1 = vld [vmem:[%s3180_s8 + $0x150] sm:$0xff] }
 0x124   : > { %v2120_v59 = vsel %vm1391_vm0, %v1367_v33, 0.0  ;;  %v1995_v2 = vrot.slane %v1994_v57, 4  ;;  %v2128_v4 = vrot.slane %v2127_v45, 4  ;;  %v2043_v40 = vsel %vm1391_vm0, %v1356_v44, 0.0  ;;  %v1170_v33 = vld [vmem:[%s3180_s8 + $0x118] sm:$0xff] }
 0x125   : > { %v1684_v26 = vrot.slane %v1683_v19, 1  ;;  %v2121_v54 = vrot.slane %v2120_v59, 4  ;;  %v2081_v7 = vrot.slane %v2080_v6, 2  ;;  %1126 = vbcast.lane.b32.xlu1 %v1124_v15, 256  ;;  %v1075_v38 = vrot.slane %v3777_v24, %v3087_v53 }
 0x126   : > { %v1293_v50 = vmul.f32 %v1165_v31, %v3808_v51  ;;  %v1678_v32 = vadd.f32 %v1677_v21, %v1676_v60  ;;  %v2129_v29 = vadd.f32 %v2128_v4, %v2127_v45  ;;  %v1600_v13 = vrot.slane %v3854_v9, 1  ;;  %v3884_v25 = vpop.permute.xlu1 %496  ;;  %v3890_v48 = vpop.permute.xlu0 %461  ;;  %v1229_v21 = vld [vmem:[%s3180_s8 + $0x2f0] sm:$0xff]  ;;  %v1222_v4 = vld [vmem:[%s3180_s8 + $0x2b8] sm:$0xff] }
 0x127   : > { %v1685_v52 = vadd.f32 %v1684_v26, %v1683_v19  ;;  %v2122_v27 = vadd.f32 %v2121_v54, %v2120_v59  ;;  %v2082_v41 = vadd.f32 %v2081_v7, %v2080_v6  ;;  %1077 = vbcast.lane.b32.xlu0 %v1075_v38, 256  ;;  %v1286_v20 = vmul.f32 %v1158_v46, %v3810_v63 }
 0x128   : > { %v1602_v8 = vsel %vm1391_vm0, %v1293_v50, 0.0  ;;  %v1996_v24 = vadd.f32 %v1995_v2, %v1994_v57  ;;  %v2130_v51 = vrot.slane %v2129_v29, 2  ;;  %v2044_v23 = vrot.slane %v2043_v40, 4  ;;  %v1241_v50 = vld [vmem:[%s3180_s8 + $0x350] sm:$0xff] }
 0x129   : > { %v3887_v12 = vsel %vm2427_vm1, %v1685_v52, %v1678_v32  ;;  %v2123_v60 = vrot.slane %v2122_v27, 2  ;;  %v2083_v58 = vrot.slane %v2082_v41, 1  ;;  %v1553_v47 = vsel %vm1391_vm0, %v1286_v20, 0.0 }
 0x12a   : > { %v1131_v63 = vrot.slane %v3759_v55, %v3087_v53  ;;  %v2131_v37 = vadd.f32 %v2130_v51, %v2129_v29  ;;  %v1603_v56 = vrot.slane %v1602_v8, 4  ;;  %v1554_v57 = vrot.slane %v1553_v47, 4  ;;  %v3903_v45 = vpop.permute.xlu1 %909  ;;  %v3906_v54 = vpop.permute.xlu0 %545 }
 0x12b   : > { %v2124_v44 = vadd.f32 %v2123_v60, %v2122_v27  ;;  %v3898_v19 = vadd.f32 %v1549_v43, %v3845_v3  ;;  %v2084_v15 = vadd.f32 %v2083_v58, %v2082_v41  ;;  %v683_v31 = vrot.slane %v3799_v22, %v3087_v53 }
 0x12c   : > { %1133 = vbcast.lane.b32.xlu1 %v1131_v63, 256  ;;  %v1305_v6 = vmul.f32 %v1177_v1, %v3828_v18  ;;  %v1997_v55 = vrot.slane %v1996_v24, 2  ;;  %v2132_v59 = vrot.slane %v2131_v37, 1  ;;  %v1555_v26 = vadd.f32 %v1554_v57, %v1553_v47  ;;  %v1171_v47 = vld [vmem:[%s3180_s8 + $0x120] sm:$0xff] }
 0x12d   : > { %v2125_v2 = vrot.slane %v2124_v44, 1  ;;  %v3910_v3 = vsel %vm2429_vm2, %v2084_v15, %v3815_v16  ;;  %685 = vbcast.lane.b32.xlu0 %v683_v31, 256  ;;  %v1298_v53 = vmul.f32 %v1170_v33, %v3831_v34  ;;  %v1357_v22 = vmul.f32 %v1229_v21, %v3852_v28 }
 0x12e   : > { %v1686_v43 = vsel %vm1391_vm0, %v1305_v6, 0.0  ;;  %v2045_v18 = vadd.f32 %v2044_v23, %v2043_v40  ;;  %v2133_v46 = vadd.f32 %v2132_v59, %v2131_v37  ;;  %v1604_v38 = vadd.f32 %v1603_v56, %v1602_v8  ;;  %v3919_v27 = vpop.permute.xlu1 %993  ;;  %v1234_v8 = vld [vmem:[%s3180_s8 + $0x318] sm:$0xff]  ;;  %v3928_v20 = vpop.permute.xlu0 %944 }
 0x12f   : > { %v2126_v7 = vadd.f32 %v2125_v2, %v2124_v44  ;;  %v1687_v32 = vrot.slane %v1686_v43, 4  ;;  %v1637_v52 = vsel %vm1391_vm0, %v1298_v53, 0.0  ;;  %v2050_v29 = vsel %vm1391_vm0, %v1357_v22, 0.0  ;;  %v1166_v6 = vld [vmem:[%s3180_s8 + $0xf8] sm:$0xff] }
 0x130   : > { %v1350_v16 = vmul.f32 %v1222_v4, %v3857_v10  ;;  %v3922_v34 = vadd.f32 %v1600_v13, %v3854_v9  ;;  %v1556_v40 = vrot.slane %v1555_v26, 2  ;;  %v1638_v41 = vrot.slane %v1637_v52, 4 }
 0x131   : > { %v3925_v28 = vsel %vm2427_vm1, %v2133_v46, %v2126_v7  ;;  %v1688_v51 = vadd.f32 %v1687_v32, %v1686_v43  ;;  %v2051_v60 = vrot.slane %v2050_v29, 4  ;;  %v1369_v10 = vmul.f32 %v1241_v50, %v3872_v61 }
 0x132   : > { %v2001_v1 = vsel %vm1391_vm0, %v1350_v16, 0.0  ;;  %v1551_v58 = vrot.slane %v3898_v19, 1  ;;  %v1998_v23 = vadd.f32 %v1997_v55, %v1996_v24  ;;  %v2046_v9 = vrot.slane %v2045_v18, 2  ;;  %v3936_v57 = vpop.permute.xlu1 %552  ;;  %v3939_v61 = vpop.permute.xlu0 %503 }
 0x133   : > { %v2002_v13 = vrot.slane %v2001_v1, 4  ;;  %v1605_v63 = vrot.slane %v1604_v38, 2  ;;  %v1689_v37 = vrot.slane %v1688_v51, 2  ;;  %v2134_v44 = vsel %vm1391_vm0, %v1369_v10, 0.0 }
 0x134   : > { %v1362_v56 = vmul.f32 %v1234_v8, %v3875_v49  ;;  %v1557_v33 = vadd.f32 %v1556_v40, %v1555_v26  ;;  %v1639_v21 = vadd.f32 %v1638_v41, %v1637_v52  ;;  %v2135_v31 = vrot.slane %v2134_v44, 4 }
 0x135   : > { %v2003_v15 = vadd.f32 %v2002_v13, %v2001_v1  ;;  %v1690_v59 = vadd.f32 %v1689_v37, %v1688_v51  ;;  %v2052_v24 = vadd.f32 %v2051_v60, %v2050_v29  ;;  %v1299_v2 = vmul.f32 %v1171_v47, %v3884_v25  ;;  %v1230_v1 = vld [vmem:[%s3180_s8 + $0x2f8] sm:$0xff] }
 0x136   : > { %v2085_v55 = vsel %vm1391_vm0, %v1362_v56, 0.0  ;;  %v1999_v4 = vrot.slane %v1998_v23, 1  ;;  %v3943_v43 = vadd.f32 %v2046_v9, %v2045_v18  ;;  %v2136_v49 = vadd.f32 %v2135_v31, %v2134_v44  ;;  %v3948_v50 = vpop.permute.xlu1 %587  ;;  %v3951_v16 = vpop.permute.xlu0 %580 }
 0x137   : > { %v2004_v53 = vrot.slane %v2003_v15, 2  ;;  %v3945_v22 = vadd.f32 %v1605_v63, %v1604_v38  ;;  %v1691_v26 = vrot.slane %v1690_v59, 1  ;;  %v2086_v46 = vrot.slane %v2085_v55, 4 }
 0x138   : > { %v1294_v7 = vmul.f32 %v1166_v6, %v3890_v48  ;;  %v1558_v32 = vrot.slane %v1557_v33, 1  ;;  %v1640_v52 = vrot.slane %v1639_v21, 2  ;;  %v2137_v29 = vrot.slane %v2136_v49, 2 }
 0x139   : > { %v1644_v25 = vsel %vm1391_vm0, %v1299_v2, 0.0  ;;  %v1552_v18 = vadd.f32 %v1551_v58, %v3898_v19  ;;  %v1692_v40 = vadd.f32 %v1691_v26, %v1690_v59  ;;  %v2053_v38 = vrot.slane %v2052_v24, 2  ;;  %v1178_v19 = vld [vmem:[%s3180_s8 + $0x158] sm:$0xff]  ;;  %v1235_v26 = vld [vmem:[%s3180_s8 + $0x320] sm:$0xff] }
 0x13a   : > { %v1609_v41 = vsel %vm1391_vm0, %v1294_v7, 0.0  ;;  %v3955_v8 = vadd.f32 %v1999_v4, %v1998_v23  ;;  %v2048_v48 = vrot.slane %v3943_v43, 1  ;;  %v2005_v51 = vadd.f32 %v2004_v53, %v2003_v15  ;;  %v3964_v58 = vpop.permute.xlu1 %1000  ;;  %v3967_v56 = vpop.permute.xlu0 %951 }
 0x13b   : > { %v2138_v60 = vadd.f32 %v2137_v29, %v2136_v49  ;;  %v3961_v10 = vsel %vm2429_vm2, %v1692_v40, %v3887_v12  ;;  %v2087_v9 = vadd.f32 %v2086_v46, %v2085_v55  ;;  %v1645_v13 = vrot.slane %v1644_v25, 4 }
 0x13c   : > { %v1610_v47 = vrot.slane %v1609_v41, 4  ;;  %v1607_v63 = vrot.slane %v3945_v22, 1  ;;  %v1559_v23 = vadd.f32 %v1558_v32, %v1557_v33  ;;  %v1641_v37 = vadd.f32 %v1640_v52, %v1639_v21  ;;  %v1242_v21 = vld [vmem:[%s3180_s8 + $0x358] sm:$0xff] }
 0x13d   : > { %v2139_v44 = vrot.slane %v2138_v60, 1  ;;  %v2054_v15 = vadd.f32 %v2053_v38, %v2052_v24  ;;  %v2451_v12 = vsel %vm2433_vm4, %v3702_v11, %v3691_v39  ;;  %v1358_v6 = vmul.f32 %v1230_v1, %v3903_v45 }
 0x13e   : > { %v1611_v31 = vadd.f32 %v1610_v47, %v1609_v41  ;;  %v2006_v59 = vrot.slane %v2005_v51, 1  ;;  %v2452_v2 = vsel %vm2435_vm5, %v3833_v62, %v2451_v12  ;;  %v1306_v33 = vmul.f32 %v1178_v19, %v3906_v54  ;;  %v3980_v46 = vpop.permute.xlu1 %1035  ;;  %v3987_v54 = vpop.permute.xlu0 %1028 }
 0x13f   : > { %v2140_v55 = vadd.f32 %v2139_v44, %v2138_v60  ;;  %v2088_v4 = vrot.slane %v2087_v9, 2  ;;  %v1646_v53 = vadd.f32 %v1645_v13, %v1644_v25  ;;  %v2453_v49 = vsel %vm2437_vm6, %v1552_v18, %v2452_v2  ;;  %v1179_v13 = vld [vmem:[%s3180_s8 + $0x160] sm:$0xff]  ;;  %v1172_v2 = vld [vmem:[%s3180_s8 + $0x128] sm:$0xff] }
 0x140   : > { %v2057_v24 = vsel %vm1391_vm0, %v1358_v6, 0.0  ;;  %v1642_v39 = vrot.slane %v1641_v37, 1  ;;  %v2454_v45 = vsel %vm2439_vm7, %v1559_v23, %v2453_v49  ;;  %v2055_v7 = vrot.slane %v2054_v15, 1 }
 0x141   : > { %v3984_v11 = vsel %vm2429_vm2, %v2140_v55, %v3925_v28  ;;  %v2058_v62 = vrot.slane %v2057_v24, 4  ;;  %v1612_v32 = vrot.slane %v1611_v31, 2  ;;  %2869 = vmatprep.mubr.msk.f32.mxu0 %vm1391_vm0, %v2454_v45  ;;  %v1693_v52 = vsel %vm1391_vm0, %v1306_v33, 0.0  ;;  %v1184_v33 = vld [vmem:[%s3180_s8 + $0x188] sm:$0xff] }
 0x142   : > { %v1370_v29 = vmul.f32 %v1242_v21, %v3919_v27  ;;  %v2007_v25 = vadd.f32 %v2006_v59, %v2005_v51  ;;  %v1694_v40 = vrot.slane %v1693_v52, 4  ;;  %v1363_v28 = vmul.f32 %v1235_v26, %v3928_v20  ;;  %v3998_v47 = vpop.permute.xlu1 %559  ;;  %v4001_v20 = vpop.permute.xlu0 %510  ;;  %v1183_v21 = vld [vmem:[%s3180_s8 + $0x180] sm:$0xff] }
 0x143   : > { %v2059_v18 = vadd.f32 %v2058_v62, %v2057_v24  ;;  %v2089_v38 = vadd.f32 %v2088_v4, %v2087_v9  ;;  %v1647_v41 = vrot.slane %v1646_v53, 2  ;;  %v2507_v1 = vsel %vm2433_vm4, %v3783_v5, %v3700_v30 }
 0x144   : > { %v2141_v60 = vsel %vm1391_vm0, %v1370_v29, 0.0  ;;  %v1695_v51 = vadd.f32 %v1694_v40, %v1693_v52  ;;  %v2092_v23 = vsel %vm1391_vm0, %v1363_v28, 0.0  ;;  %v4004_v9 = vadd.f32 %v2048_v48, %v3943_v43 }
 0x145   : > { %v2060_v27 = vrot.slane %v2059_v18, 2  ;;  %v2142_v19 = vrot.slane %v2141_v60, 4  ;;  %v1643_v44 = vadd.f32 %v1642_v39, %v1641_v37  ;;  %v1613_v12 = vadd.f32 %v1612_v32, %v1611_v31 }
 0x146   : > { %v2508_v30 = vsel %vm2435_vm5, %v3840_v0, %v2507_v1  ;;  %v2093_v6 = vrot.slane %v2092_v23, 4  ;;  %v1307_v55 = vmul.f32 %v1179_v13, %v3936_v57  ;;  %v1608_v4 = vadd.f32 %v1607_v63, %v3945_v22  ;;  %v4016_v37 = vpop.permute.xlu1 %636  ;;  %v4023_v57 = vpop.permute.xlu0 %594 }
 0x147   : > { %v2143_v5 = vadd.f32 %v2142_v19, %v2141_v60  ;;  %v2509_v59 = vsel %vm2437_vm6, %v3955_v8, %v2508_v30  ;;  %v2061_v49 = vadd.f32 %v2060_v27, %v2059_v18  ;;  %v1696_v43 = vrot.slane %v1695_v51, 2 }
 0x148   : > { %v2510_v48 = vsel %vm2439_vm7, %v2007_v25, %v2509_v59  ;;  %v4018_v31 = vadd.f32 %v2055_v7, %v2054_v15  ;;  %v2090_v0 = vrot.slane %v2089_v38, 1  ;;  %v4020_v24 = vadd.f32 %v1647_v41, %v1646_v53 }
 0x149   : > { %v2144_v26 = vrot.slane %v2143_v5, 2  ;;  %2881 = vmatprep.mubr.msk.f32.mxu1 %vm1391_vm0, %v2510_v48  ;;  %v1614_v8 = vrot.slane %v1613_v12, 1  ;;  %v1300_v39 = vmul.f32 %v1172_v2, %v3939_v61  ;;  %v1312_v22 = vmul.f32 %v1184_v33, %v3948_v50 }
 0x14a   : > { %v1311_v63 = vmul.f32 %v1183_v21, %v3951_v16  ;;  %v4030_v45 = vsel %vm2431_vm3, %v1643_v44, %v3864_v35  ;;  %v2094_v62 = vadd.f32 %v2093_v6, %v2092_v23  ;;  %v1700_v53 = vsel %vm1391_vm0, %v1307_v55, 0.0  ;;  %v4035_v61 = vpop.permute.xlu1 %958  ;;  %v4038_v18 = vpop.permute.xlu0 %643 }
 0x14b   : > { %v2145_v15 = vadd.f32 %v2144_v26, %v2143_v5  ;;  %v2062_v7 = vrot.slane %v2061_v49, 1  ;;  %v1697_v32 = vadd.f32 %v1696_v43, %v1695_v51  ;;  %v1735_v52 = vsel %vm1391_vm0, %v1312_v22, 0.0  ;;  %v1236_v5 = vld [vmem:[%s3180_s8 + $0x328] sm:$0xff] }
 0x14c   : > { %v1728_v29 = vsel %vm1391_vm0, %v1311_v63, 0.0  ;;  %v2091_v50 = vadd.f32 %v2090_v0, %v2089_v38  ;;  %v1649_v16 = vrot.slane %v4020_v24, 1  ;;  %v1736_v35 = vrot.slane %v1735_v52, 4  ;;  %v1243_v38 = vld [vmem:[%s3180_s8 + $0x360] sm:$0xff] }
 0x14d   : > { %v2146_v25 = vrot.slane %v2145_v15, 1  ;;  %v1615_v40 = vadd.f32 %v1614_v8, %v1613_v12  ;;  %v1701_v28 = vrot.slane %v1700_v53, 4  ;;  %v1651_v41 = vsel %vm1391_vm0, %v1300_v39, 0.0  ;;  %v1247_v8 = vld [vmem:[%s3180_s8 + $0x380] sm:$0xff] }
 0x14e   : > { %v1729_v60 = vrot.slane %v1728_v29, 4  ;;  %v2095_v13 = vrot.slane %v2094_v62, 2  ;;  %v1737_v27 = vadd.f32 %v1736_v35, %v1735_v52  ;;  %v2458_v51 = vsel %vm2433_vm4, %v3825_v36, %v3755_v14  ;;  %v4048_v12 = vpop.permute.xlu1 %1042  ;;  %v4055_v14 = vpop.permute.xlu0 %1007 }
 0x14f   : > { %v2147_v1 = vadd.f32 %v2146_v25, %v2145_v15  ;;  %v2063_v19 = vadd.f32 %v2062_v7, %v2061_v49  ;;  %v1698_v23 = vrot.slane %v1697_v32, 1  ;;  %v2459_v30 = vsel %vm2435_vm5, %v3922_v34, %v2458_v51 }
 0x150   : > { %v1730_v44 = vadd.f32 %v1729_v60, %v1728_v29  ;;  %v1652_v59 = vrot.slane %v1651_v41, 4  ;;  %v1738_v55 = vrot.slane %v1737_v27, 2  ;;  %v2460_v2 = vsel %vm2437_vm6, %v1608_v4, %v2459_v30 }
 0x151   : > { %v4052_v6 = vsel %vm2431_vm3, %v2147_v1, %v3984_v11  ;;  %v1702_v36 = vadd.f32 %v1701_v28, %v1700_v53  ;;  %v2461_v21 = vsel %vm2439_vm7, %v1615_v40, %v2460_v2  ;;  %v1371_v34 = vmul.f32 %v1243_v38, %v3964_v58  ;;  %v1248_v58 = vld [vmem:[%s3180_s8 + $0x388] sm:$0xff] }
 0x152   : > { %v1731_v33 = vrot.slane %v1730_v44, 2  ;;  %v4061_v49 = vsel %vm2431_vm3, %v2091_v50, %v3910_v3  ;;  %v1739_v11 = vadd.f32 %v1738_v55, %v1737_v27  ;;  %2870 = vmatmul.mubr.msk.f32.gmra.mrb[2].mxu0 %vm1391_vm0, %v2461_v21  ;;  %v1364_v4 = vmul.f32 %v1236_v5, %v3967_v56  ;;  %v4073_v39 = vpop.permute.xlu1 %1091  ;;  %v1180_v53 = vld [vmem:[%s3180_s8 + $0x168] sm:$0xff] }
 0x153   : > { %v2514_v43 = vsel %vm2433_vm4, %v3835_v42, %v3822_v17  ;;  %v2096_v48 = vadd.f32 %v2095_v13, %v2094_v62  ;;  %v2148_v26 = vsel %vm1391_vm0, %v1371_v34, 0.0  ;;  %v1699_v22 = vadd.f32 %v1698_v23, %v1697_v32  ;;  %v1173_v17 = vld [vmem:[%s3180_s8 + $0x130] sm:$0xff]  ;;  %v4079_v42 = vpop.permute.xlu0 %1084 }
 0x154   : > { %v1732_v0 = vadd.f32 %v1731_v33, %v1730_v44  ;;  %v2515_v3 = vsel %vm2435_vm5, %v4004_v9, %v2514_v43  ;;  %v1653_v63 = vadd.f32 %v1652_v59, %v1651_v41  ;;  %v1740_v15 = vrot.slane %v1739_v11, 1  ;;  %v1191_v9 = vld [vmem:[%s3180_s8 + $0x1c0] sm:$0xff] }
 0x155   : > { %v2516_v56 = vsel %vm2437_vm6, %v4018_v31, %v2515_v3  ;;  %v1703_v62 = vrot.slane %v1702_v36, 2  ;;  %v2149_v52 = vrot.slane %v2148_v26, 4  ;;  %v2099_v25 = vsel %vm1391_vm0, %v1364_v4, 0.0 }
 0x156   : > { %v1733_v7 = vrot.slane %v1732_v0, 1  ;;  %v2517_v29 = vsel %vm2439_vm7, %v2063_v19, %v2516_v56  ;;  %v1741_v50 = vadd.f32 %v1740_v15, %v1739_v11  ;;  %v1376_v32 = vmul.f32 %v1248_v58, %v3980_v46  ;;  %v4089_v60 = vpop.permute.xlu1 %566  ;;  %v1237_v58 = vld [vmem:[%s3180_s8 + $0x330] sm:$0xff] }
 0x157   : > { %2882 = vmatmul.mubr.msk.f32.gmra.mrb[2].mxu1 %vm1391_vm0, %v2517_v29  ;;  %v1375_v31 = vmul.f32 %v1247_v8, %v3987_v54  ;;  %v2097_v35 = vrot.slane %v2096_v48, 1  ;;  %v1308_v28 = vmul.f32 %v1180_v53, %v3998_v47  ;;  %v1301_v41 = vmul.f32 %v1173_v17, %v4001_v20  ;;  %v4094_v38 = vpop.permute.xlu0 %517  ;;  %v1185_v47 = vld [vmem:[%s3180_s8 + $0x190] sm:$0xff] }
 0x158   : > { %v1734_v40 = vadd.f32 %v1733_v7, %v1732_v0  ;;  %v1654_v1 = vrot.slane %v1653_v63, 2  ;;  %v2183_v13 = vsel %vm1391_vm0, %v1376_v32, 0.0  ;;  %v1319_v51 = vmul.f32 %v1191_v9, %v4016_v37 }
 0x159   : > { %v2176_v27 = vsel %vm1391_vm0, %v1375_v31, 0.0  ;;  %v2100_v54 = vrot.slane %v2099_v25, 4  ;;  %v2184_v19 = vrot.slane %v2183_v13, 4  ;;  %v1704_v44 = vadd.f32 %v1703_v62, %v1702_v36 }
 0x15a   : > { %v4097_v46 = vsel %vm2427_vm1, %v1741_v50, %v1734_v40  ;;  %v2177_v23 = vrot.slane %v2176_v27, 4  ;;  %v2150_v20 = vadd.f32 %v2149_v52, %v2148_v26  ;;  %v1707_v30 = vsel %vm1391_vm0, %v1308_v28, 0.0  ;;  %v4103_v33 = vpop.permute.xlu1 %650 }
 0x15b   : > { %v1658_v5 = vsel %vm1391_vm0, %v1301_v41, 0.0  ;;  %v2185_v59 = vadd.f32 %v2184_v19, %v2183_v13  ;;  %v1708_v2 = vrot.slane %v1707_v30, 4  ;;  %v1784_v37 = vsel %vm1391_vm0, %v1319_v51, 0.0  ;;  %v4111_v4 = vpop.permute.xlu0 %601  ;;  %v1249_v13 = vld [vmem:[%s3180_s8 + $0x390] sm:$0xff]  ;;  %v1244_v19 = vld [vmem:[%s3180_s8 + $0x368] sm:$0xff] }
 0x15c   : > { %v2178_v55 = vadd.f32 %v2177_v23, %v2176_v27  ;;  %v4108_v21 = vadd.f32 %v1649_v16, %v4020_v24  ;;  %v1655_v36 = vadd.f32 %v1654_v1, %v1653_v63  ;;  %v1659_v34 = vrot.slane %v1658_v5, 4  ;;  %v1192_v16 = vld [vmem:[%s3180_s8 + $0x1c8] sm:$0xff] }
 0x15d   : > { %v1313_v11 = vmul.f32 %v1185_v47, %v4023_v57  ;;  %v4115_v43 = vsel %vm2431_vm3, %v1699_v22, %v3961_v10  ;;  %v2101_v0 = vadd.f32 %v2100_v54, %v2099_v25  ;;  %v2186_v26 = vrot.slane %v2185_v59, 2  ;;  %v1256_v23 = vld [vmem:[%s3180_s8 + $0x3c8] sm:$0xff] }
 0x15e   : > { %v2179_v3 = vrot.slane %v2178_v55, 2  ;;  %v4118_v8 = vadd.f32 %v2097_v35, %v2096_v48  ;;  %v2151_v15 = vrot.slane %v2150_v20, 2  ;;  %v1785_v56 = vrot.slane %v1784_v37, 4 }
 0x15f   : > { %v1742_v24 = vsel %vm1391_vm0, %v1313_v11, 0.0  ;;  %v1705_v63 = vrot.slane %v1704_v44, 1  ;;  %v2187_v53 = vadd.f32 %v2186_v26, %v2185_v59  ;;  %v1709_v17 = vadd.f32 %v1708_v2, %v1707_v30  ;;  %v4124_v50 = vpop.permute.xlu1 %1014  ;;  %v1255_v59 = vld [vmem:[%s3180_s8 + $0x3c0] sm:$0xff] }
 0x160   : > { %v2180_v57 = vadd.f32 %v2179_v3, %v2178_v55  ;;  %v1656_v62 = vrot.slane %v1655_v36, 1  ;;  %v1660_v7 = vadd.f32 %v1659_v34, %v1658_v5  ;;  %v1743_v52 = vrot.slane %v1742_v24, 4  ;;  %v4126_v25 = vpop.permute.xlu0 %965  ;;  %v1181_v55 = vld [vmem:[%s3180_s8 + $0x170] sm:$0xff] }
 0x161   : > { %v1365_v10 = vmul.f32 %v1237_v58, %v4035_v61  ;;  %v2102_v22 = vrot.slane %v2101_v0, 2  ;;  %v2188_v29 = vrot.slane %v2187_v53, 1  ;;  %v1320_v48 = vmul.f32 %v1192_v16, %v4038_v18 }
 0x162   : > { %v2181_v9 = vrot.slane %v2180_v57, 1  ;;  %v2152_v32 = vadd.f32 %v2151_v15, %v2150_v20  ;;  %v1786_v31 = vadd.f32 %v1785_v56, %v1784_v37  ;;  %v1744_v35 = vadd.f32 %v1743_v52, %v1742_v24 }
 0x163   : > { %v2106_v40 = vsel %vm1391_vm0, %v1365_v10, 0.0  ;;  %v2189_v28 = vadd.f32 %v2188_v29, %v2187_v53  ;;  %v1710_v41 = vrot.slane %v1709_v17, 2  ;;  %v4130_v27 = vadd.f32 %v1705_v63, %v1704_v44  ;;  %v4145_v58 = vpop.permute.xlu1 %1098 }
 0x164   : > { %v2182_v61 = vadd.f32 %v2181_v9, %v2180_v57  ;;  %v2107_v1 = vrot.slane %v2106_v40, 4  ;;  %v4132_v18 = vadd.f32 %v1656_v62, %v1655_v36  ;;  %v1661_v51 = vrot.slane %v1660_v7, 2 }
 0x165   : > { %v1791_v54 = vsel %vm1391_vm0, %v1320_v48, 0.0  ;;  %v1745_v20 = vrot.slane %v1744_v35, 2  ;;  %v2153_v2 = vrot.slane %v2152_v32, 1  ;;  %v2103_v37 = vadd.f32 %v2102_v22, %v2101_v0  ;;  %v4147_v15 = vpop.permute.xlu0 %1049 }
 0x166   : > { %v4138_v47 = vsel %vm2427_vm1, %v2189_v28, %v2182_v61  ;;  %v2108_v30 = vadd.f32 %v2107_v1, %v2106_v40  ;;  %v1792_v5 = vrot.slane %v1791_v54, 4  ;;  %v1787_v34 = vrot.slane %v1786_v31, 2 }
 0x167   : > { %v1377_v44 = vmul.f32 %v1249_v13, %v4048_v12  ;;  %v1711_v36 = vadd.f32 %v1710_v41, %v1709_v17  ;;  %v1372_v26 = vmul.f32 %v1244_v19, %v4055_v14  ;;  %v1384_v3 = vmul.f32 %v1256_v23, %v4073_v39  ;;  %v4160_v1 = vpop.permute.xlu1 %608 }
 0x168   : > { %v1793_v11 = vadd.f32 %v1792_v5, %v1791_v54  ;;  %v1662_v56 = vadd.f32 %v1661_v51, %v1660_v7  ;;  %v1383_v16 = vmul.f32 %v1255_v59, %v4079_v42  ;;  %v1309_v0 = vmul.f32 %v1181_v55, %v4089_v60  ;;  %v1174_v42 = vld [vmem:[%s3180_s8 + $0x138] sm:$0xff] }
 0x169   : > { %v2190_v24 = vsel %vm1391_vm0, %v1377_v44, 0.0  ;;  %v1746_v63 = vadd.f32 %v1745_v20, %v1744_v35  ;;  %v2109_v12 = vrot.slane %v2108_v30, 2  ;;  %v2155_v14 = vsel %vm1391_vm0, %v1372_v26, 0.0  ;;  %v1193_v35 = vld [vmem:[%s3180_s8 + $0x1d0] sm:$0xff]  ;;  %v4162_v13 = vpop.permute.xlu0 %573 }
 0x16a   : > { %v2191_v53 = vrot.slane %v2190_v24, 4  ;;  %v1794_v57 = vrot.slane %v1793_v11, 2  ;;  %v2156_v39 = vrot.slane %v2155_v14, 4  ;;  %v2239_v17 = vsel %vm1391_vm0, %v1384_v3, 0.0  ;;  %v1186_v3 = vld [vmem:[%s3180_s8 + $0x198] sm:$0xff] }
 0x16b   : > { %v2232_v62 = vsel %vm1391_vm0, %v1383_v16, 0.0  ;;  %v4155_v7 = vadd.f32 %v2153_v2, %v2152_v32  ;;  %v2104_v52 = vrot.slane %v2103_v37, 1  ;;  %v2240_v22 = vrot.slane %v2239_v17, 4 }
 0x16c   : > { %v2192_v10 = vadd.f32 %v2191_v53, %v2190_v24  ;;  %v1788_v29 = vadd.f32 %v1787_v34, %v1786_v31  ;;  %v2157_v60 = vadd.f32 %v2156_v39, %v2155_v14  ;;  %v2233_v9 = vrot.slane %v2232_v62, 4  ;;  %v1245_v14 = vld [vmem:[%s3180_s8 + $0x370] sm:$0xff] }
 0x16d   : > { %v1714_v48 = vsel %vm1391_vm0, %v1309_v0, 0.0  ;;  %v1712_v40 = vrot.slane %v1711_v36, 1  ;;  %v1747_v28 = vrot.slane %v1746_v63, 1  ;;  %v2110_v61 = vadd.f32 %v2109_v12, %v2108_v30 }
 0x16e   : > { %v2241_v41 = vadd.f32 %v2240_v22, %v2239_v17  ;;  %v1663_v32 = vrot.slane %v1662_v56, 1  ;;  %v1795_v51 = vadd.f32 %v1794_v57, %v1793_v11  ;;  %v2193_v54 = vrot.slane %v2192_v10, 2  ;;  %v4176_v57 = vpop.permute.xlu1 %1021 }
 0x16f   : > { %v1302_v19 = vmul.f32 %v1174_v42, %v4094_v38  ;;  %v4165_v31 = vadd.f32 %v2104_v52, %v2103_v37  ;;  %v2234_v23 = vadd.f32 %v2233_v9, %v2232_v62  ;;  %v1715_v20 = vrot.slane %v1714_v48, 4  ;;  %v1238_v62 = vld [vmem:[%s3180_s8 + $0x338] sm:$0xff]  ;;  %v1257_v9 = vld [vmem:[%s3180_s8 + $0x3d0] sm:$0xff] }
 0x170   : > { %v1321_v5 = vmul.f32 %v1193_v35, %v4103_v33  ;;  %v1789_v59 = vrot.slane %v1788_v29, 1  ;;  %v2158_v55 = vrot.slane %v2157_v60, 2  ;;  %v2242_v30 = vrot.slane %v2241_v41, 2 }
 0x171   : > { %v1665_v2 = vsel %vm1391_vm0, %v1302_v19, 0.0  ;;  %v4169_v34 = vadd.f32 %v1712_v40, %v1711_v36  ;;  %v1748_v44 = vadd.f32 %v1747_v28, %v1746_v63  ;;  %v2111_v26 = vrot.slane %v2110_v61, 1  ;;  %v4178_v36 = vpop.permute.xlu0 %657 }
 0x172   : > { %v1666_v11 = vrot.slane %v1665_v2, 4  ;;  %v4172_v38 = vadd.f32 %v1663_v32, %v1662_v56  ;;  %v1796_v37 = vrot.slane %v1795_v51, 1  ;;  %v2194_v24 = vadd.f32 %v2193_v54, %v2192_v10  ;;  %v1250_v32 = vld [vmem:[%s3180_s8 + $0x398] sm:$0xff] }
 0x173   : > { %v1798_v16 = vsel %vm1391_vm0, %v1321_v5, 0.0  ;;  %v2235_v33 = vrot.slane %v2234_v23, 2  ;;  %v1716_v0 = vadd.f32 %v1715_v20, %v1714_v48  ;;  %v4180_v63 = vadd.f32 %v1789_v59, %v1788_v29 }
 0x174   : > { %v1667_v12 = vadd.f32 %v1666_v11, %v1665_v2  ;;  %v1799_v53 = vrot.slane %v1798_v16, 4  ;;  %v2159_v39 = vadd.f32 %v2158_v55, %v2157_v60  ;;  %v2243_v17 = vadd.f32 %v2242_v30, %v2241_v41  ;;  %v4200_v30 = vpop.permute.xlu1 %1105 }
 0x175   : > { %v1314_v56 = vmul.f32 %v1186_v3, %v4111_v4  ;;  %v4186_v52 = vsel %vm2429_vm2, %v1748_v44, %v4097_v46  ;;  %v4188_v10 = vadd.f32 %v2111_v26, %v2110_v61  ;;  %v4191_v48 = vadd.f32 %v1796_v37, %v1795_v51  ;;  %v1187_v46 = vld [vmem:[%s3180_s8 + $0x1a0] sm:$0xff]  ;;  %v1182_v37 = vld [vmem:[%s3180_s8 + $0x178] sm:$0xff] }
 0x176   : > { %v1668_v22 = vrot.slane %v1667_v12, 2  ;;  %v1800_v42 = vadd.f32 %v1799_v53, %v1798_v16  ;;  %v2195_v29 = vrot.slane %v2194_v24, 1  ;;  %v1373_v35 = vmul.f32 %v1245_v14, %v4124_v50  ;;  %v4202_v50 = vpop.permute.xlu0 %1056 }
 0x177   : > { %v1749_v60 = vsel %vm1391_vm0, %v1314_v56, 0.0  ;;  %v2236_v40 = vadd.f32 %v2235_v33, %v2234_v23  ;;  %v1717_v4 = vrot.slane %v1716_v0, 2  ;;  %v1366_v41 = vmul.f32 %v1238_v62, %v4126_v25 }
 0x178   : > { %v1750_v28 = vrot.slane %v1749_v60, 4  ;;  %v2160_v54 = vrot.slane %v2159_v39, 1  ;;  %v2244_v61 = vrot.slane %v2243_v17, 1  ;;  %v2162_v19 = vsel %vm1391_vm0, %v1373_v35, 0.0 }
 0x179   : > { %v1385_v51 = vmul.f32 %v1257_v9, %v4145_v58  ;;  %v1669_v20 = vadd.f32 %v1668_v22, %v1667_v12  ;;  %v1801_v5 = vrot.slane %v1800_v42, 2  ;;  %v2163_v55 = vrot.slane %v2162_v19, 4 }
 0x17a   : > { %v1751_v59 = vadd.f32 %v1750_v28, %v1749_v60  ;;  %v2113_v23 = vsel %vm1391_vm0, %v1366_v41, 0.0  ;;  %v1378_v2 = vmul.f32 %v1250_v32, %v4147_v15  ;;  %v1315_v44 = vmul.f32 %v1187_v46, %v4160_v1  ;;  %v4212_v41 = vpop.permute.xlu1 %664  ;;  %v4214_v32 = vpop.permute.xlu0 %615 }
 0x17b   : > { %v2246_v25 = vsel %vm1391_vm0, %v1385_v51, 0.0  ;;  %v2237_v26 = vrot.slane %v2236_v40, 1  ;;  %v1718_v11 = vadd.f32 %v1717_v4, %v1716_v0  ;;  %v2164_v58 = vadd.f32 %v2163_v55, %v2162_v19 }
 0x17c   : > { %v1752_v3 = vrot.slane %v1751_v59, 2  ;;  %v2114_v16 = vrot.slane %v2113_v23, 4  ;;  %v2247_v33 = vrot.slane %v2246_v25, 4  ;;  %v2197_v12 = vsel %vm1391_vm0, %v1378_v2, 0.0 }
 0x17d   : > { %v1756_v53 = vsel %vm1391_vm0, %v1315_v44, 0.0  ;;  %v1670_v14 = vrot.slane %v1669_v20, 1  ;;  %v1802_v56 = vadd.f32 %v1801_v5, %v1800_v42  ;;  %v2198_v22 = vrot.slane %v2197_v12, 4 }
 0x17e   : > { %v1753_v62 = vadd.f32 %v1752_v3, %v1751_v59  ;;  %v2165_v9 = vrot.slane %v2164_v58, 2  ;;  %v2115_v60 = vadd.f32 %v2114_v16, %v2113_v23  ;;  %v2248_v15 = vadd.f32 %v2247_v33, %v2246_v25  ;;  %v1246_v23 = vld [vmem:[%s3180_s8 + $0x378] sm:$0xff] }
 0x17f   : > { %v1310_v1 = vmul.f32 %v1182_v37, %v4162_v13  ;;  %v2196_v35 = vadd.f32 %v2195_v29, %v2194_v24  ;;  %v2245_v0 = vadd.f32 %v2244_v61, %v2243_v17  ;;  %v1757_v28 = vrot.slane %v1756_v53, 4  ;;  %v1194_v3 = vld [vmem:[%s3180_s8 + $0x1d8] sm:$0xff] }
 0x180   : > { %v1754_v4 = vrot.slane %v1753_v62, 1  ;;  %v2238_v46 = vadd.f32 %v2237_v26, %v2236_v40  ;;  %v2116_v19 = vrot.slane %v2115_v60, 2  ;;  %v2199_v51 = vadd.f32 %v2198_v22, %v2197_v12  ;;  %v1258_v33 = vld [vmem:[%s3180_s8 + $0x3d8] sm:$0xff] }
 0x181   : > { %v1721_v42 = vsel %vm1391_vm0, %v1310_v1, 0.0  ;;  %v4217_v5 = vadd.f32 %v2160_v54, %v2159_v39  ;;  %v1719_v59 = vrot.slane %v1718_v11, 1  ;;  %v2249_v55 = vrot.slane %v2248_v15, 2 }
 0x182   : > { %v1722_v13 = vrot.slane %v1721_v42, 4  ;;  %v1671_v24 = vadd.f32 %v1670_v14, %v1669_v20  ;;  %v1803_v17 = vrot.slane %v1802_v56, 1  ;;  %v4219_v29 = vadd.f32 %v2165_v9, %v2164_v58 }
 0x183   : > { %v2117_v61 = vadd.f32 %v2116_v19, %v2115_v60  ;;  %v4224_v40 = vsel %vm2429_vm2, %v2196_v35, %v4138_v47  ;;  %v1755_v25 = vadd.f32 %v1754_v4, %v1753_v62  ;;  %v1758_v2 = vadd.f32 %v1757_v28, %v1756_v53  ;;  %v1113_v12 = vpop.permute.xlu1 %1112  ;;  %v1195_v19 = vld [vmem:[%s3180_s8 + $0x1e0] sm:$0xff] }
 0x184   : > { %v2465_v39 = vsel %vm2433_vm4, %v4108_v21, %v4030_v45  ;;  %v4230_v54 = vsel %vm2427_vm1, %v2245_v0, %v2238_v46  ;;  %v2200_v20 = vrot.slane %v2199_v51, 2  ;;  %v1723_v44 = vadd.f32 %v1722_v13, %v1721_v42  ;;  %v1259_v13 = vld [vmem:[%s3180_s8 + $0x3e0] sm:$0xff] }
 0x185   : > { %v2466_v26 = vsel %vm2435_vm5, %v4132_v18, %v2465_v39  ;;  %v2118_v58 = vrot.slane %v2117_v61, 1  ;;  %v2250_v37 = vadd.f32 %v2249_v55, %v2248_v15  ;;  %v1374_v16 = vmul.f32 %v1246_v23, %v4176_v57  ;;  %v1064_v45 = vpop.permute.xlu0 %1063  ;;  %v1251_v18 = vld [vmem:[%s3180_s8 + $0x3a0] sm:$0xff]  ;;  %v1252_v39 = vld [vmem:[%s3180_s8 + $0x3a8] sm:$0xff] }
 0x186   : > { %v2467_v47 = vsel %vm2437_vm6, %v4172_v38, %v2466_v26  ;;  %v4239_v21 = vadd.f32 %v1719_v59, %v1718_v11  ;;  %v4241_v53 = vadd.f32 %v1803_v17, %v1802_v56  ;;  %v2167_v14 = vrot.slane %v4219_v29, 1 }
 0x187   : > { %v2468_v62 = vsel %vm2439_vm7, %v1671_v24, %v2467_v47  ;;  %v4248_v22 = vsel %vm2431_vm3, %v1755_v25, %v4186_v52  ;;  %v1759_v9 = vrot.slane %v1758_v2, 2  ;;  %v2169_v38 = vsel %vm1391_vm0, %v1374_v16, 0.0 }
 0x188   : > { %2872 = vmatprep.mubr.msk.f32.mxu0 %vm1391_vm0, %v2468_v62  ;;  %v1322_v57 = vmul.f32 %v1194_v3, %v4178_v36  ;;  %v2201_v11 = vadd.f32 %v2200_v20, %v2199_v51  ;;  %v1724_v56 = vrot.slane %v1723_v44, 2  ;;  %v2170_v60 = vrot.slane %v2169_v38, 4  ;;  %v1188_v51 = vld [vmem:[%s3180_s8 + $0x1a8] sm:$0xff] }
 0x189   : > { %v1386_v15 = vmul.f32 %v1258_v33, %v4200_v30  ;;  %v2119_v1 = vadd.f32 %v2118_v58, %v2117_v61  ;;  %v2251_v35 = vrot.slane %v2250_v37, 1  ;;  %v1379_v0 = vmul.f32 %v1251_v18, %v4202_v50 }
 0x18a   : > { %v1805_v52 = vsel %vm1391_vm0, %v1322_v57, 0.0  ;;  %v2171_v4 = vadd.f32 %v2170_v60, %v2169_v38  ;;  %v2521_v36 = vsel %vm2433_vm4, %v4118_v8, %v4061_v49  ;;  %v1760_v42 = vadd.f32 %v1759_v9, %v1758_v2 }
 0x18b   : > { %v1806_v28 = vrot.slane %v1805_v52, 4  ;;  %v2253_v46 = vsel %vm1391_vm0, %v1386_v15, 0.0  ;;  %v2204_v30 = vsel %vm1391_vm0, %v1379_v0, 0.0  ;;  %v2522_v55 = vsel %vm2435_vm5, %v4165_v31, %v2521_v36  ;;  %v672_v50 = vpop.permute.xlu1 %671 }
 0x18c   : > { %v2254_v59 = vrot.slane %v2253_v46, 4  ;;  %v623_v24 = vpop.permute.xlu0 %622  ;;  %v1725_v17 = vadd.f32 %v1724_v56, %v1723_v44  ;;  %v2172_v61 = vrot.slane %v2171_v4, 2  ;;  %v2205_v23 = vrot.slane %v2204_v30, 4 }
 0x18d   : > { %v2523_v25 = vsel %vm2437_vm6, %v4188_v10, %v2522_v55  ;;  %v1323_v2 = vmul.f32 %v1195_v19, %v4212_v41  ;;  %v1316_v20 = vmul.f32 %v1188_v51, %v4214_v32  ;;  %v2202_v26 = vrot.slane %v2201_v11, 1  ;;  %v1196_v55 = vld [vmem:[%s3180_s8 + $0x1e8] sm:$0xff] }
 0x18e   : > { %v2255_v49 = vadd.f32 %v2254_v59, %v2253_v46  ;;  %v2524_v8 = vsel %vm2439_vm7, %v2119_v1, %v2523_v25  ;;  %v1807_v3 = vadd.f32 %v1806_v28, %v1805_v52  ;;  %v2206_v31 = vadd.f32 %v2205_v23, %v2204_v30 }
 0x18f   : > { %2884 = vmatprep.mubr.msk.f32.mxu1 %vm1391_vm0, %v2524_v8  ;;  %v1387_v58 = vmul.f32 %v1259_v13, %v1113_v12  ;;  %v1812_v47 = vsel %vm1391_vm0, %v1323_v2, 0.0  ;;  %v1763_v16 = vsel %vm1391_vm0, %v1316_v20, 0.0  ;;  %v1380_v10 = vmul.f32 %v1252_v39, %v1064_v45  ;;  %v1120_v56 = vpop.permute.xlu1 %1119  ;;  %v1189_v13 = vld [vmem:[%s3180_s8 + $0x1b0] sm:$0xff] }
 0x190   : > { %v2256_v44 = vrot.slane %v2255_v49, 2  ;;  %v2252_v33 = vadd.f32 %v2251_v35, %v2250_v37  ;;  %v1726_v62 = vrot.slane %v1725_v17, 1  ;;  %v2207_v18 = vrot.slane %v2206_v31, 2 }
 0x191   : > { %v1813_v9 = vrot.slane %v1812_v47, 4  ;;  %v2173_v38 = vadd.f32 %v2172_v61, %v2171_v4  ;;  %v1764_v41 = vrot.slane %v1763_v16, 4  ;;  %v2260_v32 = vsel %vm1391_vm0, %v1387_v58, 0.0  ;;  %v1071_v60 = vpop.permute.xlu0 %1070  ;;  %v1253_v58 = vld [vmem:[%s3180_s8 + $0x3b0] sm:$0xff] }
 0x192   : > { %v2211_v57 = vsel %vm1391_vm0, %v1380_v10, 0.0  ;;  %v1761_v15 = vrot.slane %v1760_v42, 1  ;;  %v1808_v12 = vrot.slane %v1807_v3, 2  ;;  %v2257_v1 = vadd.f32 %v2256_v44, %v2255_v49 }
 0x193   : > { %v2208_v52 = vadd.f32 %v2207_v18, %v2206_v31  ;;  %v1814_v0 = vadd.f32 %v1813_v9, %v1812_v47  ;;  %v1765_v45 = vadd.f32 %v1764_v41, %v1763_v16  ;;  %v2261_v37 = vrot.slane %v2260_v32, 4  ;;  %v679_v39 = vpop.permute.xlu1 %678  ;;  %v1260_v31 = vld [vmem:[%s3180_s8 + $0x3e8] sm:$0xff]  ;;  %v1197_v9 = vld [vmem:[%s3180_s8 + $0x1f0] sm:$0xff] }
 0x194   : > { %v2212_v35 = vrot.slane %v2211_v57, 4  ;;  %v2168_v4 = vadd.f32 %v2167_v14, %v4219_v29  ;;  %v4282_v28 = vsel %vm2429_vm2, %v2252_v33, %v4230_v54  ;;  %v2203_v46 = vadd.f32 %v2202_v26, %v2201_v11 }
 0x195   : > { %v1727_v36 = vadd.f32 %v1726_v62, %v1725_v17  ;;  %v2174_v19 = vrot.slane %v2173_v38, 1  ;;  %v1766_v51 = vrot.slane %v1765_v45, 2  ;;  %v2262_v59 = vadd.f32 %v2261_v37, %v2260_v32  ;;  %v630_v49 = vpop.permute.xlu0 %629 }
 0x196   : > { %v2213_v30 = vadd.f32 %v2212_v35, %v2211_v57  ;;  %v4286_v61 = vadd.f32 %v1761_v15, %v1760_v42  ;;  %v4288_v23 = vadd.f32 %v1808_v12, %v1807_v3  ;;  %v2258_v25 = vrot.slane %v2257_v1, 1  ;;  %v1190_v15 = vld [vmem:[%s3180_s8 + $0x1b8] sm:$0xff] }
 0x197   : > { %v2472_v29 = vsel %vm2433_vm4, %v4130_v27, %v4115_v43  ;;  %v2209_v54 = vrot.slane %v2208_v52, 1  ;;  %v1815_v14 = vrot.slane %v1814_v0, 2  ;;  %v2263_v11 = vrot.slane %v2262_v59, 2  ;;  %v1127_v12 = vpop.permute.xlu1 %1126 }
 0x198   : > { %v2473_v17 = vsel %vm2435_vm5, %v4169_v34, %v2472_v29  ;;  %v4297_v42 = vsel %vm2431_vm3, %v2203_v46, %v4224_v40  ;;  %v1324_v2 = vmul.f32 %v1196_v55, %v672_v50  ;;  %v1317_v20 = vmul.f32 %v1189_v13, %v623_v24 }
 0x199   : > { %v2474_v8 = vsel %vm2437_vm6, %v4239_v21, %v2473_v17  ;;  %v2175_v26 = vadd.f32 %v2174_v19, %v2173_v38  ;;  %v1767_v43 = vadd.f32 %v1766_v51, %v1765_v45  ;;  %v2214_v27 = vrot.slane %v2213_v30, 2 }
 0x19a   : > { %v2475_v3 = vsel %vm2439_vm7, %v1727_v36, %v2474_v8  ;;  %v1810_v34 = vrot.slane %v4288_v23, 1  ;;  %v4305_v44 = vadd.f32 %v2258_v25, %v2257_v1  ;;  %v1819_v40 = vsel %vm1391_vm0, %v1324_v2, 0.0  ;;  %v1261_v1 = vld [vmem:[%s3180_s8 + $0x3f0] sm:$0xff] }
 0x19b   : > { %2873 = vmatmul.mubr.msk.f32.gmra.mrb[4].mxu0 %vm1391_vm0, %v2475_v3  ;;  %v1770_v21 = vsel %vm1391_vm0, %v1317_v20, 0.0  ;;  %v4310_v50 = vadd.f32 %v2209_v54, %v2208_v52  ;;  %v4312_v24 = vadd.f32 %v1815_v14, %v1814_v0  ;;  %v2264_v47 = vadd.f32 %v2263_v11, %v2262_v59  ;;  %v1078_v52 = vpop.permute.xlu0 %1077  ;;  %v1254_v0 = vld [vmem:[%s3180_s8 + $0x3b8] sm:$0xff] }
 0x19c   : > { %v2528_v16 = vsel %vm2433_vm4, %v4155_v7, %v4052_v6  ;;  %v1771_v10 = vrot.slane %v1770_v21, 4  ;;  %v1388_v62 = vmul.f32 %v1260_v31, %v1120_v56  ;;  %v1381_v18 = vmul.f32 %v1253_v58, %v1071_v60 }
 0x19d   : > { %v2529_v33 = vsel %vm2435_vm5, %v4217_v5, %v2528_v16  ;;  %v1768_v38 = vrot.slane %v1767_v43, 1  ;;  %v2215_v41 = vadd.f32 %v2214_v27, %v2213_v30  ;;  %v1820_v32 = vrot.slane %v1819_v40, 4  ;;  %v1262_v27 = vld [vmem:[%s3180_s8 + $0x3f8] sm:$0xff] }
 0x19e   : > { %v2530_v57 = vsel %vm2437_vm6, %v2168_v4, %v2529_v33  ;;  %v1772_v45 = vadd.f32 %v1771_v10, %v1770_v21  ;;  %v2267_v7 = vsel %vm1391_vm0, %v1388_v62, 0.0  ;;  %v2218_v5 = vsel %vm1391_vm0, %v1381_v18, 0.0  ;;  %v1198_v16 = vld [vmem:[%s3180_s8 + $0x1f8] sm:$0xff] }
 0x19f   : > { %v2531_v6 = vsel %vm2439_vm7, %v2175_v26, %v2530_v57  ;;  %v2265_v56 = vrot.slane %v2264_v47, 1  ;;  %v2268_v60 = vrot.slane %v2267_v7, 4  ;;  %v2219_v37 = vrot.slane %v2218_v5, 4  ;;  %v1134_v26 = vpop.permute.xlu1 %1133  ;;  %v686_v21 = vpop.permute.xlu0 %685 }
 0x1a0   : > { %2885 = vmatmul.mubr.msk.f32.gmra.mrb[4].mxu1 %vm1391_vm0, %v2531_v6  ;;  %v1325_v35 = vmul.f32 %v1197_v9, %v679_v39  ;;  %v1773_v46 = vrot.slane %v1772_v45, 2  ;;  %v1318_v4 = vmul.f32 %v1190_v15, %v630_v49  ;;  %v1389_v36 = vmul.f32 %v1261_v1, %v1127_v12 }
 0x1a1   : > { %v1382_v19 = vmul.f32 %v1254_v0, %v1078_v52  ;;  %v1821_v51 = vadd.f32 %v1820_v32, %v1819_v40  ;;  %v2269_v59 = vadd.f32 %v2268_v60, %v2267_v7  ;;  %v2220_v30 = vadd.f32 %v2219_v37, %v2218_v5 }
 0x1a2   : > { %v1826_v55 = vsel %vm1391_vm0, %v1325_v35, 0.0  ;;  %v1774_v13 = vadd.f32 %v1773_v46, %v1772_v45  ;;  %v1777_v29 = vsel %vm1391_vm0, %v1318_v4, 0.0  ;;  %v2274_v54 = vsel %vm1391_vm0, %v1389_v36, 0.0 }
 0x1a3   : > { %v1827_v25 = vrot.slane %v1826_v55, 4  ;;  %v1817_v14 = vrot.slane %v4312_v24, 1  ;;  %v2270_v11 = vrot.slane %v2269_v59, 2  ;;  %v2221_v17 = vrot.slane %v2220_v30, 2 }
 0x1a4   : > { %v1778_v39 = vrot.slane %v1777_v29, 4  ;;  %v1769_v49 = vadd.f32 %v1768_v38, %v1767_v43  ;;  %v2275_v2 = vrot.slane %v2274_v54, 4  ;;  %v2225_v20 = vsel %vm1391_vm0, %v1382_v19, 0.0 }
 0x1a5   : > { %v1828_v8 = vadd.f32 %v1827_v25, %v1826_v55  ;;  %v2216_v3 = vrot.slane %v2215_v41, 1  ;;  %v1822_v31 = vrot.slane %v1821_v51, 2  ;;  %v2222_v58 = vadd.f32 %v2221_v17, %v2220_v30 }
 0x1a6   : > { %v1779_v40 = vadd.f32 %v1778_v39, %v1777_v29  ;;  %v2266_v10 = vadd.f32 %v2265_v56, %v2264_v47  ;;  %v1775_v33 = vrot.slane %v1774_v13, 1  ;;  %v2276_v62 = vadd.f32 %v2275_v2, %v2274_v54 }
 0x1a7   : > { %v2226_v18 = vrot.slane %v2225_v20, 4  ;;  %v2271_v9 = vadd.f32 %v2270_v11, %v2269_v59  ;;  %v1829_v32 = vrot.slane %v1828_v8, 2  ;;  %v1390_v43 = vmul.f32 %v1262_v27, %v1134_v26 }
 0x1a8   : > { %v1780_v57 = vrot.slane %v1779_v40, 2  ;;  %v2223_v38 = vrot.slane %v2222_v58, 1  ;;  %v2277_v15 = vrot.slane %v2276_v62, 2  ;;  %v1326_v1 = vmul.f32 %v1198_v16, %v686_v21 }
 0x1a9   : > { %v2227_v12 = vadd.f32 %v2226_v18, %v2225_v20  ;;  %v2217_v52 = vadd.f32 %v2216_v3, %v2215_v41  ;;  %v1823_v0 = vadd.f32 %v1822_v31, %v1821_v51  ;;  %v2281_v6 = vsel %vm1391_vm0, %v1390_v43, 0.0 }
 0x1aa   : > { %v1781_v45 = vadd.f32 %v1780_v57, %v1779_v40  ;;  %v1776_v7 = vadd.f32 %v1775_v33, %v1774_v13  ;;  %v2278_v5 = vadd.f32 %v2277_v15, %v2276_v62  ;;  %v2282_v47 = vrot.slane %v2281_v6, 4 }
 0x1ab   : > { %v2228_v60 = vrot.slane %v2227_v12, 2  ;;  %v2272_v56 = vrot.slane %v2271_v9, 1  ;;  %v1830_v37 = vadd.f32 %v1829_v32, %v1828_v8  ;;  %v1833_v46 = vsel %vm1391_vm0, %v1326_v1, 0.0  ;;  %v2819_v32 = vld [vmem:[%s4424_s3] ss:$0 sm:$0xff] }
 0x1ac   : > { %v1782_v35 = vrot.slane %v1781_v45, 1  ;;  %v2224_v4 = vadd.f32 %v2223_v38, %v2222_v58  ;;  %v2283_v19 = vadd.f32 %v2282_v47, %v2281_v6  ;;  %v2479_v41 = vsel %vm2433_vm4, %v4286_v61, %v4248_v22 }
 0x1ad   : > { %v2229_v36 = vadd.f32 %v2228_v60, %v2227_v12  ;;  %v2279_v59 = vrot.slane %v2278_v5, 1  ;;  %v1834_v30 = vrot.slane %v1833_v46, 4  ;;  %v2480_v55 = vsel %vm2435_vm5, %v1769_v49, %v2479_v41 }
 0x1ae   : > { %v1783_v51 = vadd.f32 %v1782_v35, %v1781_v45  ;;  %v1824_v13 = vrot.slane %v1823_v0, 1  ;;  %v2284_v29 = vrot.slane %v2283_v19, 2  ;;  %v2481_v54 = vsel %vm2437_vm6, %v1776_v7, %v2480_v55 }
 0x1af   : > { %v2230_v25 = vrot.slane %v2229_v36, 1  ;;  %v2273_v11 = vadd.f32 %v2272_v56, %v2271_v9  ;;  %v1835_v17 = vadd.f32 %v1834_v30, %v1833_v46  ;;  %v2535_v8 = vsel %vm2433_vm4, %v4310_v50, %v4297_v42 }
 0x1b0   : > { %v2482_v39 = vsel %vm2439_vm7, %v1783_v51, %v2481_v54  ;;  %v1831_v2 = vrot.slane %v1830_v37, 1  ;;  %v2285_v61 = vadd.f32 %v2284_v29, %v2283_v19  ;;  %v2536_v49 = vsel %vm2435_vm5, %v2217_v52, %v2535_v8 }
 0x1b1   : > { %v2231_v22 = vadd.f32 %v2230_v25, %v2229_v36  ;;  %2875 = vmatprep.mubr.msk.f32.mxu0 %vm1391_vm0, %v2482_v39  ;;  %v1811_v20 = vadd.f32 %v1810_v34, %v4288_v23  ;;  %v2280_v26 = vadd.f32 %v2279_v59, %v2278_v5  ;;  %v1836_v27 = vrot.slane %v1835_v17, 2 }
 0x1b2   : > { %v2537_v3 = vsel %vm2437_vm6, %v2224_v4, %v2536_v49  ;;  %v2541_v31 = vsel %vm2431_vm3, %v4305_v44, %v4282_v28  ;;  %v1818_v42 = vadd.f32 %v1817_v14, %v4312_v24  ;;  %v2286_v50 = vrot.slane %v2285_v61, 1 }
 0x1b3   : > { %v2538_v58 = vsel %vm2439_vm7, %v2231_v22, %v2537_v3  ;;  %v2483_v40 = vsel %vm2427_vm1, %v4191_v48, %v4180_v63  ;;  %v1825_v23 = vadd.f32 %v1824_v13, %v1823_v0  ;;  %v1837_v34 = vadd.f32 %v1836_v27, %v1835_v17 }
 0x1b4   : > { %2887 = vmatprep.mubr.msk.f32.mxu1 %vm1391_vm0, %v2538_v58  ;;  %v2542_v21 = vsel %vm2433_vm4, %v2266_v10, %v2541_v31  ;;  %v2484_v28 = vsel %vm2429_vm2, %v4241_v53, %v2483_v40  ;;  %v1832_v44 = vadd.f32 %v1831_v2, %v1830_v37  ;;  %v2287_v16 = vadd.f32 %v2286_v50, %v2285_v61 }
 0x1b5   : > { %v2543_v24 = vsel %vm2435_vm5, %v2273_v11, %v2542_v21  ;;  %v2485_v14 = vsel %vm2431_vm3, %v1811_v20, %v2484_v28  ;;  %v1838_v33 = vrot.slane %v1837_v34, 1 }
 0x1b6   : > { %v2544_v62 = vsel %vm2437_vm6, %v2280_v26, %v2543_v24  ;;  %v2486_v63 = vsel %vm2433_vm4, %v1818_v42, %v2485_v14 }
 0x1b7   : > { %v2545_v48 = vsel %vm2439_vm7, %v2287_v16, %v2544_v62  ;;  %v1839_v18 = vadd.f32 %v1838_v33, %v1837_v34  ;;  %v2487_v10 = vsel %vm2435_vm5, %v1825_v23, %v2486_v63 }
 0x1b8   : > { %2888 = vmatmul.mubr.msk.f32.gmra.mrb[6].mxu1 %vm1391_vm0, %v2545_v48  ;;  %v2488_v53 = vsel %vm2437_vm6, %v1832_v44, %v2487_v10 }
 0x1b9   : > { %v2489_v9 = vsel %vm2439_vm7, %v1839_v18, %v2488_v53 }
 0x1ba   : > { %2876 = vmatmul.mubr.msk.f32.gmra.mrb[6].mxu0 %vm1391_vm0, %v2489_v9 }
 0x1de   : > { %v2868_v57 = vpop.f32.mrb[0].mxu0 }
 0x1df   : > { %v2650_v43 = vadd.f32 %v2868_v57, %v2819_v32  ;;  %v2644_v38 = vpop.f32.mrb[1].mxu0 }
 0x1e0   : > { %v2645_v15 = vadd.f32 %v2819_v32, %v2644_v38 }
 0x1e1   : > { %2725 = vst.msk [vmem:[%s4384_s13 + $0x8] sm:$0xff] %vm2723_vm8, %v2650_v43 }
 0x1e2   : > { %v2880_v12 = vpop.f32.mrb[0].mxu1  ;;  %2724 = vst.msk [vmem:[%s4384_s13] sm:$0xff] %vm2723_vm8, %v2645_v15 }
 0x1e3   : > { %v2690_v1 = vadd.f32 %v2880_v12, %v2819_v32  ;;  %v2684_v52 = vpop.f32.mrb[1].mxu1 }
 0x1e4   : > { %v2685_v0 = vadd.f32 %v2819_v32, %v2684_v52 }
 0x1e5   : > { %2733 = vst.msk [vmem:[%s4384_s13 + $0x48] sm:$0xff] %vm2723_vm8, %v2690_v1 }
 0x1e6   : > { %2732 = vst.msk [vmem:[%s4384_s13 + $0x40] sm:$0xff] %vm2723_vm8, %v2685_v0 }
 0x225   : > { %v2871_v45 = vpop.f32.mrb[2].mxu0 }
 0x226   : > { %v2660_v6 = vadd.f32 %v2871_v45, %v2819_v32  ;;  %v2654_v7 = vpop.f32.mrb[3].mxu0 }
 0x227   : > { %v2655_v5 = vadd.f32 %v2819_v32, %v2654_v7 }
 0x228   : > { %2727 = vst.msk [vmem:[%s4384_s13 + $0x18] sm:$0xff] %vm2723_vm8, %v2660_v6 }
 0x229   : > { %2726 = vst.msk [vmem:[%s4384_s13 + $0x10] sm:$0xff] %vm2723_vm8, %v2655_v5 }
 0x22a   : > { %v2883_v60 = vpop.f32.mrb[2].mxu1 }
 0x22b   : > { %v2700_v47 = vadd.f32 %v2883_v60, %v2819_v32  ;;  %v2694_v56 = vpop.f32.mrb[3].mxu1 }
 0x22c   : > { %v2695_v37 = vadd.f32 %v2819_v32, %v2694_v56 }
 0x22d   : > { %2735 = vst.msk [vmem:[%s4384_s13 + $0x58] sm:$0xff] %vm2723_vm8, %v2700_v47 }
 0x22e   : > { %2734 = vst.msk [vmem:[%s4384_s13 + $0x50] sm:$0xff] %vm2723_vm8, %v2695_v37 }
 0x26e   : > { %v2874_v35 = vpop.f32.mrb[4].mxu0 }
 0x26f   : > { %v2670_v46 = vadd.f32 %v2874_v35, %v2819_v32  ;;  %v2664_v4 = vpop.f32.mrb[5].mxu0 }
 0x270   : > { %v2665_v36 = vadd.f32 %v2819_v32, %v2664_v4 }
 0x271   : > { %2729 = vst.msk [vmem:[%s4384_s13 + $0x28] sm:$0xff] %vm2723_vm8, %v2670_v46 }
 0x272   : > { %2728 = vst.msk [vmem:[%s4384_s13 + $0x20] sm:$0xff] %vm2723_vm8, %v2665_v36 }
 0x273   : > { %v2886_v19 = vpop.f32.mrb[4].mxu1 }
 0x274   : > { %v2710_v41 = vadd.f32 %v2886_v19, %v2819_v32  ;;  %v2704_v51 = vpop.f32.mrb[5].mxu1 }
 0x275   : > { %v2705_v59 = vadd.f32 %v2819_v32, %v2704_v51 }
 0x276   : > { %2737 = vst.msk [vmem:[%s4384_s13 + $0x68] sm:$0xff] %vm2723_vm8, %v2710_v41 }
 0x277   : > { %2736 = vst.msk [vmem:[%s4384_s13 + $0x60] sm:$0xff] %vm2723_vm8, %v2705_v59 }
 0x28b   : > { %v2889_v30 = vpop.f32.mrb[6].mxu1 }
 0x28c   : > { %v2720_v55 = vadd.f32 %v2889_v30, %v2819_v32  ;;  %v2714_v13 = vpop.f32.mrb[7].mxu1 }
 0x28d   : > { %v2715_v25 = vadd.f32 %v2819_v32, %v2714_v13  ;;  %v2877_v29 = vpop.f32.mrb[6].mxu0 }
 0x28e   : > { %2739 = vst.msk [vmem:[%s4384_s13 + $0x78] sm:$0xff] %vm2723_vm8, %v2720_v55  ;;  %v2680_v54 = vadd.f32 %v2877_v29, %v2819_v32  ;;  %v2674_v11 = vpop.f32.mrb[7].mxu0 }
 0x28f   : > { %2738 = vst.msk [vmem:[%s4384_s13 + $0x70] sm:$0xff] %vm2723_vm8, %v2715_v25  ;;  %v2675_v17 = vadd.f32 %v2819_v32, %v2674_v11 }
 0x290   : > { %2731 = vst.msk [vmem:[%s4384_s13 + $0x38] sm:$0xff] %vm2723_vm8, %v2680_v54 }
 0x291   : > { %2730 = vst.msk [vmem:[%s4384_s13 + $0x30] sm:$0xff] %vm2723_vm8, %v2675_v17 }
 0x292 PF: > { %s14_s15 = sadd.s32 1, %s2920_s15  }
 0x293   : > { %p11_p5 = scmp.ge.s32.totalorder %s14_s15, 4  }
 0x295   :  { %13 = sbr.rel (!%p11_p5) target bundleno = 1 (0x1), region = 69 }

</bundles_post_ra>
